<compile_context>
chip_gen: v5e
topology: v5e:2x2
jax: 0.10.0
libtpu: 0.0.40
codegen_flags: <defaults>
</compile_context>

<pallas_src>
import functools

import numpy as np
import jax
import jax.numpy as jnp
from jax.experimental import pallas as pl
from jax.experimental.pallas import tpu as pltpu


def _gauss1d(size, sigma):
    x = np.arange(size, dtype=np.float64)
    mean = (size - 1) / 2.0
    g = np.exp(-(((x - mean) / sigma) ** 2) / 2.0)   # 1/(s*sqrt(2pi)) cancels in norm
    return (g / g.sum()).astype(np.float32)


def _build_point_filters(H, W, sH, sW, gy, gx):
    """Host-side constants folding the Gaussian 'valid' smooth + nearest
    downsample into per-sample-point filters.

    Gy (oh,H) / Gx (W,ow) are the banded Toeplitz forms of the separable
    Gaussian, S (P,oh) / T (P,ow) the F.interpolate('nearest') one-hots; only
    Sgy = S@Gy and Tgx = T@Gx^T are ever needed, so they are built directly.
    Also returns norm_grid (x, y) per point, p = a*sW + j (row-major), matching
    np.linspace(-(s-1)/s, (s-1)/s, s) i.e. coord = (2*idx - (s-1)) / s.
    """
    kH, kW = len(gy), len(gx)
    oh, ow = H - kH + 1, W - kW + 1
    P = sH * sW
    Sgy = np.zeros((P, H), np.float32)
    Tgx = np.zeros((P, W), np.float32)
    ng = np.zeros((P, 2), np.float32)
    for p in range(P):
        a, j = p // sW, p % sW
        hi = (a * oh) // sH          # nearest-interpolate source row
        wi = (j * ow) // sW          # nearest-interpolate source col
        Sgy[p, hi:hi + kH] = gy
        Tgx[p, wi:wi + kW] = gx
        ng[p, 0] = (2.0 * j - (sW - 1)) / sW   # norm_grid x
        ng[p, 1] = (2.0 * a - (sH - 1)) / sH   # norm_grid y
    return Sgy, Tgx, ng


def _shift_rows(x, dy, H, W):
    """t[i, j] = x[i + dy, j], zeros outside (dy in {-1, 0, +1})."""
    if dy == 0:
        return x
    z = jnp.zeros((1, W), jnp.float32)
    if dy == -1:
        return jnp.concatenate([z, x[:H - 1, :]], axis=0)
    return jnp.concatenate([x[1:, :], z], axis=0)


def _shift_cols(x, dx, H, W):
    """t[i, j] = x[i, j + dx], zeros outside (dx in {-1, 0, +1})."""
    if dx == 0:
        return x
    z = jnp.zeros((H, 1), jnp.float32)
    if dx == -1:
        return jnp.concatenate([z, x[:, :W - 1]], axis=1)
    return jnp.concatenate([x[:, 1:], z], axis=1)


# ---------------------------------------------------------------------------
# One fused Pallas kernel per batch element (grid=(B,), "parallel"):
#   3x3 same-pad conv (UNet stand-in) -> [Gaussian smooth + nearest downsample
#   as one MXU matmul per channel] -> bilinear grid_sample -> last-write-wins
#   scatter ("expand").  No intermediate round-trips HBM.
# ---------------------------------------------------------------------------
def _fused_kernel(sgy_ref, tgx_ref, ng_ref, mdi_ref, gt_ref,
                  dvf_ref, gts_ref, sparse_ref, *, w, bias):
    f32 = jnp.float32
    H, W = mdi_ref.shape[1], mdi_ref.shape[2]
    P = sgy_ref.shape[0]

    x = mdi_ref[0]                              # (H, W)
    gt = gt_ref[0]                              # (H, W)

    # ---- stage 1: 3x3 same-padding conv, 1 -> 2 channels (taps shared). -----
    acc0 = jnp.full((H, W), float(bias[0]), f32)
    acc1 = jnp.full((H, W), float(bias[1]), f32)
    for ky in range(3):
        xr = _shift_rows(x, ky - 1, H, W)
        for kx in range(3):
            t = _shift_cols(xr, kx - 1, H, W)
            acc0 = acc0 + float(w[0, ky, kx]) * t
            acc1 = acc1 + float(w[1, ky, kx]) * t
    dvf_ref[0, 0] = acc0                        # each channel stored exactly once
    dvf_ref[0, 1] = acc1

    # ---- stages 2+3 (fused): Gaussian smooth + nearest downsample to the P
    # sample points == one MXU matmul per channel + elementwise + lane reduce.
    sgy = sgy_ref[...]                          # (P, H) constant
    tgx = tgx_ref[...]                          # (P, W) constant
    svf_x = jnp.sum(jnp.dot(sgy, acc0, preferred_element_type=f32) * tgx,
                    axis=1, keepdims=True)      # (P, 1)
    svf_y = jnp.sum(jnp.dot(sgy, acc1, preferred_element_type=f32) * tgx,
                    axis=1, keepdims=True)      # (P, 1)

    gxc = svf_x + ng_ref[:, 0:1]                # grid_to_sample x  (P, 1)
    gyc = svf_y + ng_ref[:, 1:2]                # grid_to_sample y  (P, 1)
    gts_ref[0, :, 0:1] = gxc
    gts_ref[0, :, 1:2] = gyc

    # ---- stage 4: bilinear grid_sample (align_corners=False, zeros pad). ----
    iota_w = jax.lax.broadcasted_iota(jnp.int32, (P, W), 1)
    iota_h = jax.lax.broadcasted_iota(jnp.int32, (P, H), 1)
    ix = ((gxc + 1.0) * float(W) - 1.0) * 0.5
    iy = ((gyc + 1.0) * float(H) - 1.0) * 0.5
    x0f = jnp.floor(ix)
    y0f = jnp.floor(iy)
    fx = ix - x0f
    fy = iy - y0f
    x0 = x0f.astype(jnp.int32)
    y0 = y0f.astype(jnp.int32)
    Wx = (jnp.where(iota_w == x0, 1.0 - fx, 0.0)
          + jnp.where(iota_w == x0 + 1, fx, 0.0))             # (P, W); OOB -> 0
    Wy = (jnp.where(iota_h == y0, 1.0 - fy, 0.0)
          + jnp.where(iota_h == y0 + 1, fy, 0.0))             # (P, H)
    rows = jnp.dot(Wy, gt, preferred_element_type=f32)        # (P, W)   (MXU)
    vals = jnp.sum(rows * Wx, axis=1, keepdims=True)          # (P, 1)

    # ---- stage 5: expand() — scatter with last-write-wins dedup. ------------
    # int() truncation + clamp of the torch loop == floor + clip for the
    # post-clamp range, so floor/clip matches.
    rtf = jnp.clip(jnp.floor((gyc + 1.0) * 0.5 * float(H)), 0.0, float(H - 1))
    ctf = jnp.clip(jnp.floor((gxc + 1.0) * 0.5 * float(W)), 0.0, float(W - 1))
    Rh = jnp.where(iota_h == rtf.astype(jnp.int32), 1.0, 0.0)   # (P, H)
    Rc = jnp.where(iota_w == ctf.astype(jnp.int32), 1.0, 0.0)   # (P, W)

    # Flip exact-integer target coords to lane orientation with one tiny
    # (P,1)x(P,P) identity contraction each, then dedup with broadcast
    # compares (no (P,H)x(H,P) one-hot contractions, no PxP f32 matmuls).
    pio = jax.lax.broadcasted_iota(jnp.int32, (P, P), 0)
    qio = jax.lax.broadcasted_iota(jnp.int32, (P, P), 1)
    eye = jnp.where(pio == qio, 1.0, 0.0)                       # (P, P)
    later = qio > pio                                           # q written after p
    rt_row = jnp.einsum('pk,pq->kq', rtf, eye,
                        preferred_element_type=f32)             # (1, P) == rtf^T
    ct_row = jnp.einsum('pk,pq->kq', ctf, eye,
                        preferred_element_type=f32)             # (1, P)
    same = (jnp.abs(rt_row - rtf) < 0.5) & (jnp.abs(ct_row - ctf) < 0.5)
    dup = jnp.sum(jnp.where(same & later, 1.0, 0.0),
                  axis=1, keepdims=True)                        # later hit on same cell?
    kv = jnp.where(dup > 0.5, 0.0, vals)                        # keep only last writer
    sparse_ref[0] = jnp.einsum('ph,pw->hw', Rh * kv, Rc,
                               preferred_element_type=f32)


# ---------------------------------------------------------------------------
# Module port (eval-path semantics).
# ---------------------------------------------------------------------------
class SparseDepthPrediction:
    def __init__(self, samplesH, samplesW, shape, ret_samples=False,
                 dataset="nyu_v2", training=False, seed=42):
        self.samplesH = int(samplesH)
        self.samplesW = int(samplesW)
        self.shape = tuple(shape)
        self.ret_samples = ret_samples
        self.dataset = dataset
        self.training = training

        B, _, H, W = self.shape
        sH, sW = self.samplesH, self.samplesW
        P = sH * sW

        # Deterministic stand-in "UNet" parameters (1 -> 2 channels, 3x3 conv).
        # TODO(synk): pytorch_prototyping_orig.Unet source is not provided; it is
        #             replaced by a single deterministic 3x3 conv here.
        # TODO(synk): weights are baked into the kernel as Python floats, so a
        #             weight change retraces/recompiles (inference-only port).
        k = jax.random.PRNGKey(seed)
        self.w = np.asarray(jax.random.normal(k, (2, 3, 3), jnp.float32)) * 0.2
        self.bias = np.zeros((2,), np.float32)

        # TODO(synk): torch jitters (samplesH, samplesW) with random.randint;
        #             fixed to 0 jitter here for determinism.
        kH = int(2 * H / (sH + 1))
        kW = int(2 * W / (sW + 1))
        sigH = 2 * H / (sH + 1) / 3
        sigW = 2 * W / (sW + 1) / 3
        gy = _gauss1d(kH, sigH)
        gx = _gauss1d(kW, sigW)

        sgy, tgx, ng = _build_point_filters(H, W, sH, sW, gy, gx)
        self._sgy = jnp.asarray(sgy)
        self._tgx = jnp.asarray(tgx)
        self._ng = jnp.asarray(ng)

        kern = functools.partial(_fused_kernel, w=self.w, bias=self.bias)

        self._fused = pl.pallas_call(
            kern,
            out_shape=(jax.ShapeDtypeStruct((B, 2, H, W), jnp.float32),   # dense_vf
                       jax.ShapeDtypeStruct((B, P, 2), jnp.float32),      # grid_to_sample
                       jax.ShapeDtypeStruct((B, H, W), jnp.float32)),     # sparse depth
            grid=(B,),
            in_specs=[pl.BlockSpec((P, H), lambda b: (0, 0)),       # Sgy  (constant)
                      pl.BlockSpec((P, W), lambda b: (0, 0)),       # Tgx  (constant)
                      pl.BlockSpec((P, 2), lambda b: (0, 0)),       # norm grid (constant)
                      pl.BlockSpec((1, H, W), lambda b: (b, 0, 0)),     # mdi[b]
                      pl.BlockSpec((1, H, W), lambda b: (b, 0, 0))],    # gt[b]
            out_specs=(pl.BlockSpec((1, 2, H, W), lambda b: (b, 0, 0, 0)),
                       pl.BlockSpec((1, P, 2), lambda b: (b, 0, 0)),
                       pl.BlockSpec((1, H, W), lambda b: (b, 0, 0))),
            compiler_params=pltpu.CompilerParams(
                dimension_semantics=("parallel",),          # shard batches over cores
                vmem_limit_bytes=48 * 1024 * 1024),         # headroom, < v7x 64 MiB
        )

        # Coord features: built in __init__ in the original module, unused in forward.
        self.xx_channel, self.yy_channel = self._get_coord_feature(self.shape)

        self._jit_forward = jax.jit(self._forward_device)

    @staticmethod
    def _get_coord_feature(shape):
        B, _, H, W = shape
        xx = np.tile((np.arange(H, dtype=np.float32) / (H - 1))[None, None, :, None],
                     (B, 1, 1, W))
        yy = np.tile((np.arange(W, dtype=np.float32) / (W - 1))[None, None, None, :],
                     (B, 1, H, 1))
        return xx, yy

    def _forward_device(self, mdi, gt):
        B, _, H, W = self.shape
        sH, sW = self.samplesH, self.samplesW
        dvf, gts, sparse = self._fused(self._sgy, self._tgx, self._ng,
                                       mdi[:, 0].astype(jnp.float32),
                                       gt[:, 0].astype(jnp.float32))
        # NHWC permute kept only for parity with the torch module's return
        # contract (a fused consumer should take the NCHW kernel output directly).
        dense_vf = jnp.transpose(dvf, (0, 2, 3, 1))            # (B, H, W, 2)
        grid_to_sample = gts.reshape(B, sH, sW, 2)
        sparse_d = sparse.reshape(B, 1, H, W)
        if (not self.training) and self.dataset == "kitti":
            # mirrors the original's hard-coded row range (clipped like torch slicing)
            sparse_d = sparse_d.at[:, :, 0:96, :].set(0.0)
        if self.ret_samples:
            # TODO(synk): original returns a host int via np.count_nonzero (forces a
            #             device->host sync); a device scalar is returned instead.
            samps = jnp.count_nonzero(sparse_d)
            return sparse_d, dense_vf, grid_to_sample, samps
        return sparse_d, dense_vf, grid_to_sample

    def __call__(self, batch_data):
        return self._jit_forward(batch_data["mdi"], batch_data["gt"])


if __name__ == "__main__":
    B, H, W = 2, 16, 16
    key = jax.random.PRNGKey(0)
    k1, k2 = jax.random.split(key)
    mdi = jax.random.normal(k1, (B, 1, H, W), dtype=jnp.float32)
    gt = jax.random.uniform(k2, (B, 1, H, W), dtype=jnp.float32) * 10.0

    model = SparseDepthPrediction(samplesH=4, samplesW=4, shape=(B, 1, H, W),
                                  dataset="nyu_v2", training=False)
    sparse_d, dense_vf, grid_to_sample = model({"mdi": mdi, "gt": gt})
    jax.block_until_ready((sparse_d, dense_vf, grid_to_sample))
    assert sparse_d.shape == (B, 1, H, W)
    assert dense_vf.shape == (B, H, W, 2)
    assert grid_to_sample.shape == (B, 4, 4, 2)
    assert bool(jnp.all(jnp.isfinite(sparse_d)))
    assert bool(jnp.all(jnp.isfinite(dense_vf)))
    assert bool(jnp.all(jnp.isfinite(grid_to_sample)))
    print("KERNEL_OK")
</pallas_src>

<mosaic_0001>
module attributes {stable_mosaic.version = 11 : i64} {
  func.func @_fused_kernel(%arg0: i32, %arg1: memref<16x16xf32, #tpu.memory_space<vmem>>, %arg2: memref<16x16xf32, #tpu.memory_space<vmem>>, %arg3: memref<16x2xf32, #tpu.memory_space<vmem>>, %arg4: memref<1x16x16xf32, #tpu.memory_space<vmem>>, %arg5: memref<1x16x16xf32, #tpu.memory_space<vmem>>, %arg6: memref<1x2x16x16xf32, #tpu.memory_space<vmem>>, %arg7: memref<1x16x2xf32, #tpu.memory_space<vmem>>, %arg8: memref<1x16x16xf32, #tpu.memory_space<vmem>>) attributes {dimension_semantics = [#tpu.dimension_semantics<parallel>], iteration_bounds = array<i64: 2>, scalar_prefetch = 0 : i64, scratch_operands = 0 : i64, tpu.core_type = #tpu.core_type<tc>, window_params = [{pipeline_mode = #tpu.pipeline_mode<synchronous>, transform_indices = @transform_0, window_bounds = array<i64: 16, 16>}, {pipeline_mode = #tpu.pipeline_mode<synchronous>, transform_indices = @transform_1, window_bounds = array<i64: 16, 16>}, {pipeline_mode = #tpu.pipeline_mode<synchronous>, transform_indices = @transform_2, window_bounds = array<i64: 16, 2>}, {transform_indices = @transform_3, window_bounds = array<i64: 1, 16, 16>}, {transform_indices = @transform_4, window_bounds = array<i64: 1, 16, 16>}, {transform_indices = @transform_5, window_bounds = array<i64: 1, 2, 16, 16>}, {transform_indices = @transform_6, window_bounds = array<i64: 1, 16, 2>}, {transform_indices = @transform_7, window_bounds = array<i64: 1, 16, 16>}]} {
    %c0 = arith.constant 0 : index
    %c0_0 = arith.constant 0 : index
    %c0_1 = arith.constant 0 : index
    %0 = vector.load %arg4[%c0, %c0_0, %c0_1] : memref<1x16x16xf32, #tpu.memory_space<vmem>>, vector<1x16x16xf32>
    %1 = vector.shape_cast %0 : vector<1x16x16xf32> to vector<16x16xf32>
    %c0_2 = arith.constant 0 : index
    %c0_3 = arith.constant 0 : index
    %c0_4 = arith.constant 0 : index
    %2 = vector.load %arg5[%c0_2, %c0_3, %c0_4] : memref<1x16x16xf32, #tpu.memory_space<vmem>>, vector<1x16x16xf32>
    %3 = vector.shape_cast %2 : vector<1x16x16xf32> to vector<16x16xf32>
    %cst = arith.constant 0.000000e+00 : f32
    %4 = vector.broadcast %cst : f32 to vector<16x16xf32>
    %cst_5 = arith.constant 0.000000e+00 : f32
    %5 = vector.broadcast %cst_5 : f32 to vector<16x16xf32>
    %cst_6 = arith.constant 0.000000e+00 : f32
    %6 = vector.broadcast %cst_6 : f32 to vector<1x16xf32>
    %7 = vector.extract_strided_slice %1 {offsets = [0, 0], sizes = [15, 16], strides = [1, 1]} : vector<16x16xf32> to vector<15x16xf32>
    %8 = tpu.concatenate %6, %7 in 0 : vector<1x16xf32>, vector<15x16xf32> -> vector<16x16xf32>
    %cst_7 = arith.constant 0.000000e+00 : f32
    %9 = vector.broadcast %cst_7 : f32 to vector<16x1xf32>
    %10 = vector.extract_strided_slice %8 {offsets = [0, 0], sizes = [16, 15], strides = [1, 1]} : vector<16x16xf32> to vector<16x15xf32>
    %11 = tpu.concatenate %9, %10 in 1 : vector<16x1xf32>, vector<16x15xf32> -> vector<16x16xf32>
    %cst_8 = arith.constant -0.0056609232 : f32
    %12 = vector.broadcast %cst_8 : f32 to vector<16x16xf32>
    %13 = arith.mulf %12, %11 : vector<16x16xf32>
    %14 = arith.addf %4, %13 : vector<16x16xf32>
    %cst_9 = arith.constant 0.182034075 : f32
    %15 = vector.broadcast %cst_9 : f32 to vector<16x16xf32>
    %16 = arith.mulf %15, %11 : vector<16x16xf32>
    %17 = arith.addf %5, %16 : vector<16x16xf32>
    %cst_10 = arith.constant 0.0934263691 : f32
    %18 = vector.broadcast %cst_10 : f32 to vector<16x16xf32>
    %19 = arith.mulf %18, %8 : vector<16x16xf32>
    %20 = arith.addf %14, %19 : vector<16x16xf32>
    %cst_11 = arith.constant -0.0768993198 : f32
    %21 = vector.broadcast %cst_11 : f32 to vector<16x16xf32>
    %22 = arith.mulf %21, %8 : vector<16x16xf32>
    %23 = arith.addf %17, %22 : vector<16x16xf32>
    %cst_12 = arith.constant 0.000000e+00 : f32
    %24 = vector.broadcast %cst_12 : f32 to vector<16x1xf32>
    %25 = vector.extract_strided_slice %8 {offsets = [0, 1], sizes = [16, 15], strides = [1, 1]} : vector<16x16xf32> to vector<16x15xf32>
    %26 = tpu.concatenate %25, %24 in 1 : vector<16x15xf32>, vector<16x1xf32> -> vector<16x16xf32>
    %cst_13 = arith.constant 0.0591405928 : f32
    %27 = vector.broadcast %cst_13 : f32 to vector<16x16xf32>
    %28 = arith.mulf %27, %26 : vector<16x16xf32>
    %29 = arith.addf %20, %28 : vector<16x16xf32>
    %cst_14 = arith.constant 0.227964669 : f32
    %30 = vector.broadcast %cst_14 : f32 to vector<16x16xf32>
    %31 = arith.mulf %30, %26 : vector<16x16xf32>
    %32 = arith.addf %23, %31 : vector<16x16xf32>
    %cst_15 = arith.constant 0.000000e+00 : f32
    %33 = vector.broadcast %cst_15 : f32 to vector<16x1xf32>
    %34 = vector.extract_strided_slice %1 {offsets = [0, 0], sizes = [16, 15], strides = [1, 1]} : vector<16x16xf32> to vector<16x15xf32>
    %35 = tpu.concatenate %33, %34 in 1 : vector<16x1xf32>, vector<16x15xf32> -> vector<16x16xf32>
    %cst_16 = arith.constant 0.0307091828 : f32
    %36 = vector.broadcast %cst_16 : f32 to vector<16x16xf32>
    %37 = arith.mulf %36, %35 : vector<16x16xf32>
    %38 = arith.addf %29, %37 : vector<16x16xf32>
    %cst_17 = arith.constant 0.289157242 : f32
    %39 = vector.broadcast %cst_17 : f32 to vector<16x16xf32>
    %40 = arith.mulf %39, %35 : vector<16x16xf32>
    %41 = arith.addf %32, %40 : vector<16x16xf32>
    %cst_18 = arith.constant -0.0248065647 : f32
    %42 = vector.broadcast %cst_18 : f32 to vector<16x16xf32>
    %43 = arith.mulf %42, %1 : vector<16x16xf32>
    %44 = arith.addf %38, %43 : vector<16x16xf32>
    %cst_19 = arith.constant 0.216181323 : f32
    %45 = vector.broadcast %cst_19 : f32 to vector<16x16xf32>
    %46 = arith.mulf %45, %1 : vector<16x16xf32>
    %47 = arith.addf %41, %46 : vector<16x16xf32>
    %cst_20 = arith.constant 0.000000e+00 : f32
    %48 = vector.broadcast %cst_20 : f32 to vector<16x1xf32>
    %49 = vector.extract_strided_slice %1 {offsets = [0, 1], sizes = [16, 15], strides = [1, 1]} : vector<16x16xf32> to vector<16x15xf32>
    %50 = tpu.concatenate %49, %48 in 1 : vector<16x15xf32>, vector<16x1xf32> -> vector<16x16xf32>
    %cst_21 = arith.constant 0.0433846302 : f32
    %51 = vector.broadcast %cst_21 : f32 to vector<16x16xf32>
    %52 = arith.mulf %51, %50 : vector<16x16xf32>
    %53 = arith.addf %44, %52 : vector<16x16xf32>
    %cst_22 = arith.constant -0.0112586422 : f32
    %54 = vector.broadcast %cst_22 : f32 to vector<16x16xf32>
    %55 = arith.mulf %54, %50 : vector<16x16xf32>
    %56 = arith.addf %47, %55 : vector<16x16xf32>
    %cst_23 = arith.constant 0.000000e+00 : f32
    %57 = vector.broadcast %cst_23 : f32 to vector<1x16xf32>
    %58 = vector.extract_strided_slice %1 {offsets = [1, 0], sizes = [15, 16], strides = [1, 1]} : vector<16x16xf32> to vector<15x16xf32>
    %59 = tpu.concatenate %58, %57 in 0 : vector<15x16xf32>, vector<1x16xf32> -> vector<16x16xf32>
    %cst_24 = arith.constant 0.000000e+00 : f32
    %60 = vector.broadcast %cst_24 : f32 to vector<16x1xf32>
    %61 = vector.extract_strided_slice %59 {offsets = [0, 0], sizes = [16, 15], strides = [1, 1]} : vector<16x16xf32> to vector<16x15xf32>
    %62 = tpu.concatenate %60, %61 in 1 : vector<16x1xf32>, vector<16x15xf32> -> vector<16x16xf32>
    %cst_25 = arith.constant -0.288175792 : f32
    %63 = vector.broadcast %cst_25 : f32 to vector<16x16xf32>
    %64 = arith.mulf %63, %62 : vector<16x16xf32>
    %65 = arith.addf %53, %64 : vector<16x16xf32>
    %cst_26 = arith.constant 0.181918904 : f32
    %66 = vector.broadcast %cst_26 : f32 to vector<16x16xf32>
    %67 = arith.mulf %66, %62 : vector<16x16xf32>
    %68 = arith.addf %56, %67 : vector<16x16xf32>
    %cst_27 = arith.constant 0.151171982 : f32
    %69 = vector.broadcast %cst_27 : f32 to vector<16x16xf32>
    %70 = arith.mulf %69, %59 : vector<16x16xf32>
    %71 = arith.addf %65, %70 : vector<16x16xf32>
    %cst_28 = arith.constant 0.111469232 : f32
    %72 = vector.broadcast %cst_28 : f32 to vector<16x16xf32>
    %73 = arith.mulf %72, %59 : vector<16x16xf32>
    %74 = arith.addf %68, %73 : vector<16x16xf32>
    %cst_29 = arith.constant 0.000000e+00 : f32
    %75 = vector.broadcast %cst_29 : f32 to vector<16x1xf32>
    %76 = vector.extract_strided_slice %59 {offsets = [0, 1], sizes = [16, 15], strides = [1, 1]} : vector<16x16xf32> to vector<16x15xf32>
    %77 = tpu.concatenate %76, %75 in 1 : vector<16x15xf32>, vector<16x1xf32> -> vector<16x16xf32>
    %cst_30 = arith.constant 0.104281925 : f32
    %78 = vector.broadcast %cst_30 : f32 to vector<16x16xf32>
    %79 = arith.mulf %78, %77 : vector<16x16xf32>
    %80 = arith.addf %71, %79 : vector<16x16xf32>
    %cst_31 = arith.constant 0.0438114367 : f32
    %81 = vector.broadcast %cst_31 : f32 to vector<16x16xf32>
    %82 = arith.mulf %81, %77 : vector<16x16xf32>
    %83 = arith.addf %74, %82 : vector<16x16xf32>
    %c0_32 = arith.constant 0 : index
    %c0_33 = arith.constant 0 : index
    %c0_34 = arith.constant 0 : index
    %c0_35 = arith.constant 0 : index
    %84 = vector.load %arg6[%c0_32, %c0_33, %c0_34, %c0_35] : memref<1x2x16x16xf32, #tpu.memory_space<vmem>>, vector<1x1x16x16xf32>
    %85 = vector.shape_cast %84 : vector<1x1x16x16xf32> to vector<16x16xf32>
    %86 = vector.shape_cast %80 : vector<16x16xf32> to vector<1x1x16x16xf32>
    tpu.vector_store %arg6[%c0_32, %c0_33, %c0_34, %c0_35], %86 {strides = array<i32>} : memref<1x2x16x16xf32, #tpu.memory_space<vmem>>, vector<1x1x16x16xf32>,
    %c0_36 = arith.constant 0 : index
    %c1 = arith.constant 1 : index
    %c0_37 = arith.constant 0 : index
    %c0_38 = arith.constant 0 : index
    %87 = vector.load %arg6[%c0_36, %c1, %c0_37, %c0_38] : memref<1x2x16x16xf32, #tpu.memory_space<vmem>>, vector<1x1x16x16xf32>
    %88 = vector.shape_cast %87 : vector<1x1x16x16xf32> to vector<16x16xf32>
    %89 = vector.shape_cast %83 : vector<16x16xf32> to vector<1x1x16x16xf32>
    tpu.vector_store %arg6[%c0_36, %c1, %c0_37, %c0_38], %89 {strides = array<i32>} : memref<1x2x16x16xf32, #tpu.memory_space<vmem>>, vector<1x1x16x16xf32>,
    %c0_39 = arith.constant 0 : index
    %c0_40 = arith.constant 0 : index
    %90 = vector.load %arg1[%c0_39, %c0_40] : memref<16x16xf32, #tpu.memory_space<vmem>>, vector<16x16xf32>
    %c0_41 = arith.constant 0 : index
    %c0_42 = arith.constant 0 : index
    %91 = vector.load %arg2[%c0_41, %c0_42] : memref<16x16xf32, #tpu.memory_space<vmem>>, vector<16x16xf32>
    %cst_43 = arith.constant dense<0.000000e+00> : vector<16x16xf32>
    %92 = tpu.matmul %90, %80, %cst_43 {dimension_numbers = #tpu.dot_dimension_numbers<[1], [0], [0], [1], [0, 0, 1, 1], [], []>} : vector<16x16xf32>, vector<16x16xf32>, vector<16x16xf32> -> vector<16x16xf32>
    %93 = arith.mulf %92, %91 : vector<16x16xf32>
    %cst_44 = arith.constant dense<0.000000e+00> : vector<16xf32>
    %94 = vector.multi_reduction <add>, %93, %cst_44 [1] : vector<16x16xf32> to vector<16xf32>
    %95 = vector.shape_cast %94 : vector<16xf32> to vector<16x1xf32>
    %cst_45 = arith.constant dense<0.000000e+00> : vector<16x16xf32>
    %96 = tpu.matmul %90, %83, %cst_45 {dimension_numbers = #tpu.dot_dimension_numbers<[1], [0], [0], [1], [0, 0, 1, 1], [], []>} : vector<16x16xf32>, vector<16x16xf32>, vector<16x16xf32> -> vector<16x16xf32>
    %97 = arith.mulf %96, %91 : vector<16x16xf32>
    %cst_46 = arith.constant dense<0.000000e+00> : vector<16xf32>
    %98 = vector.multi_reduction <add>, %97, %cst_46 [1] : vector<16x16xf32> to vector<16xf32>
    %99 = vector.shape_cast %98 : vector<16xf32> to vector<16x1xf32>
    %c0_47 = arith.constant 0 : index
    %c0_48 = arith.constant 0 : index
    %100 = vector.load %arg3[%c0_47, %c0_48] : memref<16x2xf32, #tpu.memory_space<vmem>>, vector<16x1xf32>
    %101 = arith.addf %95, %100 : vector<16x1xf32>
    %c0_49 = arith.constant 0 : index
    %c1_50 = arith.constant 1 : index
    %102 = vector.load %arg3[%c0_49, %c1_50] : memref<16x2xf32, #tpu.memory_space<vmem>>, vector<16x1xf32>
    %103 = arith.addf %99, %102 : vector<16x1xf32>
    %c0_51 = arith.constant 0 : index
    %c0_52 = arith.constant 0 : index
    %c0_53 = arith.constant 0 : index
    %104 = vector.load %arg7[%c0_51, %c0_52, %c0_53] : memref<1x16x2xf32, #tpu.memory_space<vmem>>, vector<1x16x1xf32>
    %105 = vector.shape_cast %104 : vector<1x16x1xf32> to vector<16x1xf32>
    %106 = vector.shape_cast %101 : vector<16x1xf32> to vector<1x16x1xf32>
    tpu.vector_store %arg7[%c0_51, %c0_52, %c0_53], %106 {strides = array<i32>} : memref<1x16x2xf32, #tpu.memory_space<vmem>>, vector<1x16x1xf32>,
    %c0_54 = arith.constant 0 : index
    %c0_55 = arith.constant 0 : index
    %c1_56 = arith.constant 1 : index
    %107 = vector.load %arg7[%c0_54, %c0_55, %c1_56] : memref<1x16x2xf32, #tpu.memory_space<vmem>>, vector<1x16x1xf32>
    %108 = vector.shape_cast %107 : vector<1x16x1xf32> to vector<16x1xf32>
    %109 = vector.shape_cast %103 : vector<16x1xf32> to vector<1x16x1xf32>
    tpu.vector_store %arg7[%c0_54, %c0_55, %c1_56], %109 {strides = array<i32>} : memref<1x16x2xf32, #tpu.memory_space<vmem>>, vector<1x16x1xf32>,
    %110 = tpu.iota {dimensions = array<i32: 1>} : vector<16x16xi32>
    %111 = tpu.iota {dimensions = array<i32: 1>} : vector<16x16xi32>
    %cst_57 = arith.constant 1.000000e+00 : f32
    %112 = vector.broadcast %cst_57 : f32 to vector<16x1xf32>
    %113 = arith.addf %101, %112 : vector<16x1xf32>
    %cst_58 = arith.constant 1.600000e+01 : f32
    %114 = vector.broadcast %cst_58 : f32 to vector<16x1xf32>
    %115 = arith.mulf %113, %114 : vector<16x1xf32>
    %cst_59 = arith.constant 1.000000e+00 : f32
    %116 = vector.broadcast %cst_59 : f32 to vector<16x1xf32>
    %117 = arith.subf %115, %116 : vector<16x1xf32>
    %cst_60 = arith.constant 5.000000e-01 : f32
    %118 = vector.broadcast %cst_60 : f32 to vector<16x1xf32>
    %119 = arith.mulf %117, %118 : vector<16x1xf32>
    %cst_61 = arith.constant 1.000000e+00 : f32
    %120 = vector.broadcast %cst_61 : f32 to vector<16x1xf32>
    %121 = arith.addf %103, %120 : vector<16x1xf32>
    %cst_62 = arith.constant 1.600000e+01 : f32
    %122 = vector.broadcast %cst_62 : f32 to vector<16x1xf32>
    %123 = arith.mulf %121, %122 : vector<16x1xf32>
    %cst_63 = arith.constant 1.000000e+00 : f32
    %124 = vector.broadcast %cst_63 : f32 to vector<16x1xf32>
    %125 = arith.subf %123, %124 : vector<16x1xf32>
    %cst_64 = arith.constant 5.000000e-01 : f32
    %126 = vector.broadcast %cst_64 : f32 to vector<16x1xf32>
    %127 = arith.mulf %125, %126 : vector<16x1xf32>
    %128 = math.floor %119 : vector<16x1xf32>
    %129 = math.floor %127 : vector<16x1xf32>
    %130 = arith.subf %119, %128 : vector<16x1xf32>
    %131 = arith.subf %127, %129 : vector<16x1xf32>
    %132 = arith.fptosi %128 : vector<16x1xf32> to vector<16x1xi32>
    %133 = arith.fptosi %129 : vector<16x1xf32> to vector<16x1xi32>
    %134 = vector.broadcast %132 : vector<16x1xi32> to vector<16x16xi32>
    %135 = arith.cmpi eq, %110, %134 : vector<16x16xi32>
    %cst_65 = arith.constant 1.000000e+00 : f32
    %136 = vector.broadcast %cst_65 : f32 to vector<16x1xf32>
    %137 = arith.subf %136, %130 : vector<16x1xf32>
    %cst_66 = arith.constant 0.000000e+00 : f32
    %138 = vector.shape_cast %137 : vector<16x1xf32> to vector<16x1xf32>
    %139 = vector.broadcast %138 : vector<16x1xf32> to vector<16x16xf32>
    %140 = vector.broadcast %cst_66 : f32 to vector<16x16xf32>
    %141 = arith.select %135, %139, %140 : vector<16x16xi1>, vector<16x16xf32>
    %c1_i32 = arith.constant 1 : i32
    %142 = vector.broadcast %c1_i32 : i32 to vector<16x1xi32>
    %143 = arith.addi %132, %142 : vector<16x1xi32>
    %144 = vector.broadcast %143 : vector<16x1xi32> to vector<16x16xi32>
    %145 = arith.cmpi eq, %110, %144 : vector<16x16xi32>
    %cst_67 = arith.constant 0.000000e+00 : f32
    %146 = vector.shape_cast %130 : vector<16x1xf32> to vector<16x1xf32>
    %147 = vector.broadcast %146 : vector<16x1xf32> to vector<16x16xf32>
    %148 = vector.broadcast %cst_67 : f32 to vector<16x16xf32>
    %149 = arith.select %145, %147, %148 : vector<16x16xi1>, vector<16x16xf32>
    %150 = arith.addf %141, %149 : vector<16x16xf32>
    %151 = vector.broadcast %133 : vector<16x1xi32> to vector<16x16xi32>
    %152 = arith.cmpi eq, %111, %151 : vector<16x16xi32>
    %cst_68 = arith.constant 1.000000e+00 : f32
    %153 = vector.broadcast %cst_68 : f32 to vector<16x1xf32>
    %154 = arith.subf %153, %131 : vector<16x1xf32>
    %cst_69 = arith.constant 0.000000e+00 : f32
    %155 = vector.shape_cast %154 : vector<16x1xf32> to vector<16x1xf32>
    %156 = vector.broadcast %155 : vector<16x1xf32> to vector<16x16xf32>
    %157 = vector.broadcast %cst_69 : f32 to vector<16x16xf32>
    %158 = arith.select %152, %156, %157 : vector<16x16xi1>, vector<16x16xf32>
    %c1_i32_70 = arith.constant 1 : i32
    %159 = vector.broadcast %c1_i32_70 : i32 to vector<16x1xi32>
    %160 = arith.addi %133, %159 : vector<16x1xi32>
    %161 = vector.broadcast %160 : vector<16x1xi32> to vector<16x16xi32>
    %162 = arith.cmpi eq, %111, %161 : vector<16x16xi32>
    %cst_71 = arith.constant 0.000000e+00 : f32
    %163 = vector.shape_cast %131 : vector<16x1xf32> to vector<16x1xf32>
    %164 = vector.broadcast %163 : vector<16x1xf32> to vector<16x16xf32>
    %165 = vector.broadcast %cst_71 : f32 to vector<16x16xf32>
    %166 = arith.select %162, %164, %165 : vector<16x16xi1>, vector<16x16xf32>
    %167 = arith.addf %158, %166 : vector<16x16xf32>
    %cst_72 = arith.constant dense<0.000000e+00> : vector<16x16xf32>
    %168 = tpu.matmul %167, %3, %cst_72 {dimension_numbers = #tpu.dot_dimension_numbers<[1], [0], [0], [1], [0, 0, 1, 1], [], []>} : vector<16x16xf32>, vector<16x16xf32>, vector<16x16xf32> -> vector<16x16xf32>
    %169 = arith.mulf %168, %150 : vector<16x16xf32>
    %cst_73 = arith.constant dense<0.000000e+00> : vector<16xf32>
    %170 = vector.multi_reduction <add>, %169, %cst_73 [1] : vector<16x16xf32> to vector<16xf32>
    %171 = vector.shape_cast %170 : vector<16xf32> to vector<16x1xf32>
    %cst_74 = arith.constant 1.000000e+00 : f32
    %172 = vector.broadcast %cst_74 : f32 to vector<16x1xf32>
    %173 = arith.addf %103, %172 : vector<16x1xf32>
    %cst_75 = arith.constant 5.000000e-01 : f32
    %174 = vector.broadcast %cst_75 : f32 to vector<16x1xf32>
    %175 = arith.mulf %173, %174 : vector<16x1xf32>
    %cst_76 = arith.constant 1.600000e+01 : f32
    %176 = vector.broadcast %cst_76 : f32 to vector<16x1xf32>
    %177 = arith.mulf %175, %176 : vector<16x1xf32>
    %178 = math.floor %177 : vector<16x1xf32>
    %cst_77 = arith.constant 0.000000e+00 : f32
    %cst_78 = arith.constant 1.500000e+01 : f32
    %179 = vector.broadcast %cst_77 : f32 to vector<16x1xf32>
    %180 = arith.maximumf %179, %178 : vector<16x1xf32>
    %181 = vector.broadcast %cst_78 : f32 to vector<16x1xf32>
    %182 = arith.minimumf %181, %180 : vector<16x1xf32>
    %cst_79 = arith.constant 1.000000e+00 : f32
    %183 = vector.broadcast %cst_79 : f32 to vector<16x1xf32>
    %184 = arith.addf %101, %183 : vector<16x1xf32>
    %cst_80 = arith.constant 5.000000e-01 : f32
    %185 = vector.broadcast %cst_80 : f32 to vector<16x1xf32>
    %186 = arith.mulf %184, %185 : vector<16x1xf32>
    %cst_81 = arith.constant 1.600000e+01 : f32
    %187 = vector.broadcast %cst_81 : f32 to vector<16x1xf32>
    %188 = arith.mulf %186, %187 : vector<16x1xf32>
    %189 = math.floor %188 : vector<16x1xf32>
    %cst_82 = arith.constant 0.000000e+00 : f32
    %cst_83 = arith.constant 1.500000e+01 : f32
    %190 = vector.broadcast %cst_82 : f32 to vector<16x1xf32>
    %191 = arith.maximumf %190, %189 : vector<16x1xf32>
    %192 = vector.broadcast %cst_83 : f32 to vector<16x1xf32>
    %193 = arith.minimumf %192, %191 : vector<16x1xf32>
    %194 = arith.fptosi %182 : vector<16x1xf32> to vector<16x1xi32>
    %195 = vector.broadcast %194 : vector<16x1xi32> to vector<16x16xi32>
    %196 = arith.cmpi eq, %111, %195 : vector<16x16xi32>
    %cst_84 = arith.constant 1.000000e+00 : f32
    %cst_85 = arith.constant 0.000000e+00 : f32
    %197 = vector.broadcast %cst_84 : f32 to vector<16x16xf32>
    %198 = vector.broadcast %cst_85 : f32 to vector<16x16xf32>
    %199 = arith.select %196, %197, %198 : vector<16x16xi1>, vector<16x16xf32>
    %200 = arith.fptosi %193 : vector<16x1xf32> to vector<16x1xi32>
    %201 = vector.broadcast %200 : vector<16x1xi32> to vector<16x16xi32>
    %202 = arith.cmpi eq, %110, %201 : vector<16x16xi32>
    %cst_86 = arith.constant 1.000000e+00 : f32
    %cst_87 = arith.constant 0.000000e+00 : f32
    %203 = vector.broadcast %cst_86 : f32 to vector<16x16xf32>
    %204 = vector.broadcast %cst_87 : f32 to vector<16x16xf32>
    %205 = arith.select %202, %203, %204 : vector<16x16xi1>, vector<16x16xf32>
    %206 = tpu.iota {dimensions = array<i32: 0>} : vector<16x16xi32>
    %207 = tpu.iota {dimensions = array<i32: 1>} : vector<16x16xi32>
    %208 = arith.cmpi eq, %206, %207 : vector<16x16xi32>
    %cst_88 = arith.constant 1.000000e+00 : f32
    %cst_89 = arith.constant 0.000000e+00 : f32
    %209 = vector.broadcast %cst_88 : f32 to vector<16x16xf32>
    %210 = vector.broadcast %cst_89 : f32 to vector<16x16xf32>
    %211 = arith.select %208, %209, %210 : vector<16x16xi1>, vector<16x16xf32>
    %212 = arith.cmpi sgt, %207, %206 : vector<16x16xi32>
    "tpu.trace_start"() <{level = 10 : i32, message = "pk,pq->kq"}> : () -> ()
    %cst_90 = arith.constant dense<0.000000e+00> : vector<1x16xf32>
    %213 = tpu.matmul %182, %211, %cst_90 {dimension_numbers = #tpu.dot_dimension_numbers<[0], [0], [1], [1], [0, 1, 1, 1], [], []>} : vector<16x1xf32>, vector<16x16xf32>, vector<1x16xf32> -> vector<1x16xf32>
    %cst_91 = arith.constant dense<0.000000e+00> : vector<1x16xf32>
    %214 = tpu.matmul %193, %211, %cst_91 {dimension_numbers = #tpu.dot_dimension_numbers<[0], [0], [1], [1], [0, 1, 1, 1], [], []>} : vector<16x1xf32>, vector<16x16xf32>, vector<1x16xf32> -> vector<1x16xf32>
    "tpu.trace_stop"() : () -> ()
    %215 = vector.broadcast %213 : vector<1x16xf32> to vector<16x16xf32>
    %216 = vector.broadcast %182 : vector<16x1xf32> to vector<16x16xf32>
    %217 = arith.subf %215, %216 : vector<16x16xf32>
    %218 = math.absf %217 : vector<16x16xf32>
    %cst_92 = arith.constant 5.000000e-01 : f32
    %219 = vector.broadcast %cst_92 : f32 to vector<16x16xf32>
    %220 = arith.cmpf olt, %218, %219 : vector<16x16xf32>
    %221 = vector.broadcast %214 : vector<1x16xf32> to vector<16x16xf32>
    %222 = vector.broadcast %193 : vector<16x1xf32> to vector<16x16xf32>
    %223 = arith.subf %221, %222 : vector<16x16xf32>
    %224 = math.absf %223 : vector<16x16xf32>
    %cst_93 = arith.constant 5.000000e-01 : f32
    %225 = vector.broadcast %cst_93 : f32 to vector<16x16xf32>
    %226 = arith.cmpf olt, %224, %225 : vector<16x16xf32>
    %227 = arith.andi %220, %226 : vector<16x16xi1>
    %228 = arith.andi %227, %212 : vector<16x16xi1>
    %cst_94 = arith.constant 1.000000e+00 : f32
    %cst_95 = arith.constant 0.000000e+00 : f32
    %229 = vector.broadcast %cst_94 : f32 to vector<16x16xf32>
    %230 = vector.broadcast %cst_95 : f32 to vector<16x16xf32>
    %231 = arith.select %228, %229, %230 : vector<16x16xi1>, vector<16x16xf32>
    %cst_96 = arith.constant dense<0.000000e+00> : vector<16xf32>
    %232 = vector.multi_reduction <add>, %231, %cst_96 [1] : vector<16x16xf32> to vector<16xf32>
    %233 = vector.shape_cast %232 : vector<16xf32> to vector<16x1xf32>
    %cst_97 = arith.constant 5.000000e-01 : f32
    %234 = vector.broadcast %cst_97 : f32 to vector<16x1xf32>
    %235 = arith.cmpf ogt, %233, %234 : vector<16x1xf32>
    %cst_98 = arith.constant 0.000000e+00 : f32
    %236 = vector.broadcast %cst_98 : f32 to vector<16x1xf32>
    %237 = arith.select %235, %236, %171 : vector<16x1xi1>, vector<16x1xf32>
    %238 = vector.broadcast %237 : vector<16x1xf32> to vector<16x16xf32>
    %239 = arith.mulf %199, %238 : vector<16x16xf32>
    "tpu.trace_start"() <{level = 10 : i32, message = "ph,pw->hw"}> : () -> ()
    %cst_99 = arith.constant dense<0.000000e+00> : vector<16x16xf32>
    %240 = tpu.matmul %239, %205, %cst_99 {dimension_numbers = #tpu.dot_dimension_numbers<[0], [0], [1], [1], [0, 1, 1, 1], [], []>} : vector<16x16xf32>, vector<16x16xf32>, vector<16x16xf32> -> vector<16x16xf32>
    "tpu.trace_stop"() : () -> ()
    %c0_100 = arith.constant 0 : index
    %c0_101 = arith.constant 0 : index
    %c0_102 = arith.constant 0 : index
    %241 = vector.load %arg8[%c0_100, %c0_101, %c0_102] : memref<1x16x16xf32, #tpu.memory_space<vmem>>, vector<1x16x16xf32>
    %242 = vector.shape_cast %241 : vector<1x16x16xf32> to vector<16x16xf32>
    %243 = vector.shape_cast %240 : vector<16x16xf32> to vector<1x16x16xf32>
    tpu.vector_store %arg8[%c0_100, %c0_101, %c0_102], %243 {strides = array<i32>} : memref<1x16x16xf32, #tpu.memory_space<vmem>>, vector<1x16x16xf32>,
    return
  }
  func.func @transform_0(%arg0: i32) -> (i32, i32) {
    %c0_i32 = arith.constant 0 : i32
    %c0_i32_0 = arith.constant 0 : i32
    %c0_i32_1 = arith.constant 0 : i32
    return %c0_i32, %c0_i32_0 : i32, i32
  }
  func.func @transform_1(%arg0: i32) -> (i32, i32) {
    %c0_i32 = arith.constant 0 : i32
    %c0_i32_0 = arith.constant 0 : i32
    %c0_i32_1 = arith.constant 0 : i32
    return %c0_i32, %c0_i32_0 : i32, i32
  }
  func.func @transform_2(%arg0: i32) -> (i32, i32) {
    %c0_i32 = arith.constant 0 : i32
    %c0_i32_0 = arith.constant 0 : i32
    %c0_i32_1 = arith.constant 0 : i32
    return %c0_i32, %c0_i32_0 : i32, i32
  }
  func.func @transform_3(%arg0: i32) -> (i32, i32, i32) {
    %c0_i32 = arith.constant 0 : i32
    %c0_i32_0 = arith.constant 0 : i32
    %c0_i32_1 = arith.constant 0 : i32
    return %arg0, %c0_i32, %c0_i32_0 : i32, i32, i32
  }
  func.func @transform_4(%arg0: i32) -> (i32, i32, i32) {
    %c0_i32 = arith.constant 0 : i32
    %c0_i32_0 = arith.constant 0 : i32
    %c0_i32_1 = arith.constant 0 : i32
    return %arg0, %c0_i32, %c0_i32_0 : i32, i32, i32
  }
  func.func @transform_5(%arg0: i32) -> (i32, i32, i32, i32) {
    %c0_i32 = arith.constant 0 : i32
    %c0_i32_0 = arith.constant 0 : i32
    %c0_i32_1 = arith.constant 0 : i32
    %c0_i32_2 = arith.constant 0 : i32
    return %arg0, %c0_i32, %c0_i32_0, %c0_i32_1 : i32, i32, i32, i32
  }
  func.func @transform_6(%arg0: i32) -> (i32, i32, i32) {
    %c0_i32 = arith.constant 0 : i32
    %c0_i32_0 = arith.constant 0 : i32
    %c0_i32_1 = arith.constant 0 : i32
    return %arg0, %c0_i32, %c0_i32_0 : i32, i32, i32
  }
  func.func @transform_7(%arg0: i32) -> (i32, i32, i32) {
    %c0_i32 = arith.constant 0 : i32
    %c0_i32_0 = arith.constant 0 : i32
    %c0_i32_1 = arith.constant 0 : i32
    return %arg0, %c0_i32, %c0_i32_0 : i32, i32, i32
  }
}

</mosaic_0001>

<bundles_post_ra>
// kernel: _forward_device.1
= control target key start
LH: loop header
LB: loop body
LE: loop exit
PB: predicated region body
PF: predicated region fallthrough
CT: control target
= control target key end

     0   :  { %s2103_s0 = inlined_call_operand.hbm [shape: f32[16,16], index: 0, kind: input, shape index: {}]   ;;  %s2104_s1 = inlined_call_operand.hbm [shape: f32[16,16], index: 1, kind: input, shape index: {}]   ;;  %s2105_s2 = inlined_call_operand.hbm [shape: f32[16,2], index: 2, kind: input, shape index: {}]   ;;  %s2106_s3 = inlined_call_operand.hbm [shape: f32[2,16,16], index: 3, kind: input, shape index: {}]   ;;  %s2107_s4 = inlined_call_operand.hbm [shape: f32[2,16,16], index: 4, kind: input, shape index: {}]   ;;  %s2108_s5 = inlined_call_operand.vmem [shape: f32[2,2,16,16], index: 5, kind: output, shape index: {0}]   ;;  %s2109_s6 = inlined_call_operand.vmem [shape: f32[2,16,2], index: 6, kind: output, shape index: {1}]   ;;  %s2110_s7 = inlined_call_operand.hbm [shape: f32[2,16,16], index: 7, kind: output, shape index: {2}]  }
   0x1   :  { %2121 = sst [smem:[#allocation21_spill]] %s2104_s1 }
   0x2   :  { %2122 = sst [smem:[#allocation22_spill]] %s2106_s3 }
   0x3   :  { %13 = vsyncpa [#allocation3], 0 }
   0x4   :  { %14 = vsyncpa [#allocation6], 0 }
   0x5   :  { %15 = vsyncpa [#allocation9], 0 }
   0x6   :  { %17 = vsyncpa [#allocation9 + $0x1], 0 }
   0x7   :  { %18 = vsyncpa [#allocation4], 0 }
   0x8   :  { %20 = vsyncpa [#allocation4 + $0x1], 0  ;;  %s1749_s24 = smov 0   ;;  %s1751_s25 = smov 0  }
   0x9   :  { %s1753_s26 = smov 0   ;;  %s1755_s27 = smov 0  }
   0xa LB: > { %2123 = sst [smem:[#allocation16_spill]] %s1690_s26  ;;  %s1770_s28 = sadd.s32 4294967295, %s1694_s27   ;;  %s1694_s27 = sphi %s1755_s27, %s2145_s27   ;;  %s1690_s26 = sphi %s1753_s26, %s2147_s26   ;;  %s1686_s25 = sphi %s1751_s25, %s2149_s25   ;;  %s1682_s24 = sphi %s1749_s24, %s2148_s24  }
   0xb   : > { %2124 = sst [smem:[#allocation17_spill]] %s1694_s27  ;;  %s1295_s29 = sadd.s32 4294967294, %s1694_s27  }
   0xc   : > { %p109_p0 = scmp.ne.s32.totalorder %s1686_s25, %s1682_s24  ;;  %p2119_p1 = scmp.eq.s32.totalorder %s1770_s28, 0 }
   0xd   : > { %p211_p2 = scmp.eq.s32.totalorder %s1770_s28, 1  ;;  %p217_p3 = scmp.eq.s32.totalorder %s1295_s29, 1 }
   0xe   : > { %p1779_p4 = por %p2119_p1, %p109_p0  ;;  %p1296_p5 = scmp.ge.s32.totalorder %s1694_s27, 1 }
   0xf   : > { %p1784_p6 = por %p217_p3, %p109_p0  ;;  %p224_p7 = scmp.lt.s32.totalorder %s1694_s27, 3 }
  0x10   : > { %s2129_s1 = sld [smem:[#allocation21_spill]]  ;;  %s1696_s13 = smov [#allocation5]  }
  0x11   : > { %s2126_s8 = scalar_select %p1784_p6, 1, 0 }
  0x12   : > { %p1789_p8 = pnand %p1296_p5, %p224_p7  ;;  %s251_s14 = sshll.u32 %s1696_s13, 4  ;;  %s252_s14 = int_to_ptr.vmem [resolvable:$true] %s251_s14 }
  0x13   : > { %2127 = sst [smem:[#allocation18_spill]] %s2126_s8  ;;  %s1806_s16 = sadd.s32 1, %s1694_s27  }
  0x14   : > { %p1386_p9 = pneg %p1789_p8  ;;  %2131 = sst [smem:[#allocation19_spill]] %s1806_s16 }
  0x15   : > { %s2111_s17 = smov 128   ;;  %s2113_s18 = smov 8  }
  0x16   : > { %s249_s12 = sshll.u32 %s2129_s1, 4  ;;  %p1801_p11 = pnand %p1386_p9, %p2119_p1  ;;  %s250_s12 = int_to_ptr.hbm [resolvable:$true] %s249_s12 }
  0x17   : > { %s93_s19 = ssub.s32 %s1694_s27, %s1806_s16  ;;  %s96_s20 = sadd.s32 1, %s1690_s26 }
  0x18   : > { %1392 = dma.hbm_to_vmem [thread:$0]  (!%p1801_p11), %s250_s12, 256, %s252_s14, [#allocation6], %s2111_s17, %s2111_s17, %s2113_s18  }
  0x19   : > { %p94_p12 = scmp.eq.s32.totalorder %s93_s19, 0  ;;  %p103_p13 = scmp.ne.s32.totalorder %s1690_s26, %s1686_s25 }
  0x1a   : > { %p104_p0 = scmp.eq.s32.totalorder %s1694_s27, 0  ;;  %p1410_p3 = scmp.lt.s32.totalorder %s1694_s27, 2 }
  0x1b   : > { %s1821_s21 = scalar_select %p94_p12, %s1690_s26, %s96_s20  }
  0x1c   : > { %p105_p5 = por %p104_p0, %p103_p13  ;;  %p1825_p7 = por %p211_p2, %p103_p13 }
  0x1d   : > { %2132 = sst [smem:[#allocation20_spill]] %s1821_s21  ;;  %s279_s23 = sand.u32 1, %s1694_s27  }
  0x1e   : > { %s281_s29 = sand.u32 1, %s1690_s26   ;;  %s1345_s11 = sshll.u32 %s1694_s27, 4 }
  0x1f   : > { %s1831_s10 = sshll.u32 %s281_s29, 4  ;;  %s2134_s3 = sld [smem:[#allocation22_spill]] }
  0x20   : > { %s283_s19 = scalar_lea.vmem [#allocation8], %s1831_s10  ;;  %p1840_p2 = pnand %p1410_p3, %p105_p5 }
  0x21   : > { %s291_s17 = sshll.u32 %s283_s19, 4  ;;  %s310_s29 = scalar_lea.hbm %s2107_s4, %s1345_s11  ;;  %s292_s17 = int_to_ptr.vmem [resolvable:$true] %s291_s17 }
  0x22   : > { %s311_s26 = sshll.u32 %s310_s29, 4  ;;  %s1847_s16 = scalar_lea.sflag [#allocation9], %s279_s23  ;;  %s1866_s26 = int_to_ptr.hbm [resolvable:$true] %s311_s26 }
  0x23   : > { %p1504_p12 = pneg %p1840_p2 }
  0x25   : > { %s288_s14 = scalar_lea.hbm %s2134_s3, %s1345_s11  ;;  %s1507_s1 = scalar_lea.hbm %s2134_s3, 32 }
  0x26   : > { %s289_s20 = sshll.u32 %s288_s14, 4  ;;  %s290_s20 = int_to_ptr.hbm [resolvable:$true] %s289_s20 }
  0x27   : > { %s1500_s12 = sshra.s32 %s290_s20, 4  ;;  %s1501_s12 = int_to_ptr.hbm [resolvable:$true] %s1500_s12 }
  0x28   : > { %s1502_s13 = scalar_lea.hbm %s1501_s12, 16  ;;  %p1508_p3 = scmp.lt.s32.totalorder %s1501_s12, %s2134_s3 }
  0x29   : > { %p1503_p9 = scmp.ne.s32.totalorder %s1501_s12, %s1502_s13  ;;  %p1509_p5 = scmp.lt.s32.totalorder %s1507_s1, %s1502_s13 }
  0x2b   : > { %p1505_p13 = pnand %p1504_p12, %p1503_p9  ;;  %p1510_p10 = por %p1509_p5, %p1508_p3 }
  0x2d   : > { %p1506_p0 = pneg %p1505_p13 }
  0x2f   : > { %p1511_p1 = pnand %p1510_p10, %p1506_p0 }
  0x31   : > { %1514 = shalt.err (!%p1511_p1)
}
  0x32   : > { %s2136_s23 = smov 8   ;;  %s2137_s11 = smov 128  }
  0x33   : > { %1399 = dma.hbm_to_vmem [thread:$0]  (!%p1840_p2), %s290_s20, 256, %s292_s17, %s1847_s16, %s2137_s11, %s2137_s11, %s2136_s23  }
  0x34   : > { %s235_s27 = sshll.u32 %s2103_s0, 4  ;;  %s1699_s12 = smov [#allocation2]   ;;  %s236_s27 = int_to_ptr.hbm [resolvable:$true] %s235_s27 }
  0x35   : > { %s237_s13 = sshll.u32 %s1699_s12, 4  ;;  %s263_s21 = sshll.u32 %s2105_s2, 4  ;;  %s238_s13 = int_to_ptr.vmem [resolvable:$true] %s237_s13  ;;  %s264_s21 = int_to_ptr.hbm [resolvable:$true] %s263_s21 }
  0x36   : > { %s305_s3 = scalar_lea.vmem [#allocation10], %s1831_s10  ;;  %s1700_s17 = smov [#allocation7]  }
  0x37   : > { %s313_s8 = sshll.u32 %s305_s3, 4  ;;  %s265_s20 = sshll.u32 %s1700_s17, 4  ;;  %s314_s8 = int_to_ptr.vmem [resolvable:$true] %s313_s8  ;;  %s266_s20 = int_to_ptr.vmem [resolvable:$true] %s265_s20 }
  0x38   : > { %1389 = dma.hbm_to_vmem [thread:$0]  (!%p1801_p11), %s236_s27, 256, %s238_s13, [#allocation3], %s2137_s11, %s2137_s11, %s2136_s23  }
  0x39   : > { %1395 = dma.hbm_to_vmem [thread:$0]  (!%p1801_p11), %s264_s21, 256, %s266_s20, [#allocation6], %s2137_s11, %s2137_s11, %s2136_s23  }
  0x3a   : > { %s1590_s29 = sshra.s32 %s1866_s26, 4  ;;  %s1597_s27 = scalar_lea.hbm %s2107_s4, 32  ;;  %s1591_s29 = int_to_ptr.hbm [resolvable:$true] %s1590_s29 }
  0x3b   : > { %s1592_s10 = scalar_lea.hbm %s1591_s29, 16  ;;  %p1598_p13 = scmp.lt.s32.totalorder %s1591_s29, %s2107_s4 }
  0x3c   : > { %p1593_p1 = scmp.ne.s32.totalorder %s1591_s29, %s1592_s10  ;;  %p1599_p0 = scmp.lt.s32.totalorder %s1597_s27, %s1592_s10 }
  0x3e   : > { %p1595_p10 = pnand %p1593_p1, %p1504_p12  ;;  %p1600_p3 = por %p1599_p0, %p1598_p13 }
  0x40   : > { %p1596_p9 = pneg %p1595_p10 }
  0x42   : > { %p1601_p5 = pnand %p1600_p3, %p1596_p9 }
  0x44   : > { %1604 = shalt.err (!%p1601_p5)
}
  0x45   : > { %1402 = dma.hbm_to_vmem [thread:$0]  (!%p1840_p2), %s1866_s26, 256, %s314_s8, %s1847_s16, %s2137_s11, %s2137_s11, %s2136_s23  }
  0x46   : > { %325 = sbr.rel (%p1789_p8) target bundleno = 1378 (0x562), region = 40  ;;  %p2138_p11 = scmp.eq.s32.totalorder (!%p1789_p8), %s1770_s28, 0 }
  0x4b   : > { %1665 = dma.done.wait (%p2138_p11), [#allocation3], 256   ;;  %p2139_p12 = pmov %p2138_p11 }
  0x4c   : > { %p2140_p1 = pmov %p2138_p11 }
  0x4d   : > { %1667 = vsyncadd (%p2139_p12), [#allocation3], 4294967040 }
  0x4e   : > { %1669 = dma.done.wait (%p2140_p1), [#allocation6], 512   ;;  %p2141_p10 = pmov %p2140_p1 }
  0x4f   : > { %s342_s26 = sand.u32 1, %s1770_s28   ;;  %s344_s8 = sand.u32 1, %s1686_s25  }
  0x50   : > { %1671 = vsyncadd (%p2141_p10), [#allocation6], 4294966784  ;;  %s1916_s9 = sshll.u32 %s344_s8, 4  ;;  %s343_s15 = scalar_lea.sflag [#allocation9], %s342_s26 }
  0x51   : > { %s346_s16 = scalar_lea.vmem [#allocation8], %s1916_s9 }
  0x52   : > { %1673 = dma.done.wait (%p1779_p4), %s343_s15, 512  }
  0x53   : > { %1675 = vsyncadd (%p1779_p4), %s343_s15, 4294966784  ;;  %v1923_v0 = vld [vmem:[%s346_s16] sm:$0xff]  ;;  %v1925_v1 = vld [vmem:[%s346_s16 + $0x8] sm:$0xff]  ;;  %vm419_vm0 = vcmask 1040384   ;;  %s1701_s18 = smov 1   ;;  %s1702_s23 = smov 127  }
  0x54   : > { %v420_v2 = vrot.slane %v1923_v0, 7  ;;  %v421_v3 = vrot.slane %v1925_v1, 7  ;;  %471 = vrot.lane.b32.xlu2 %v1925_v1, %s1701_s18  ;;  %v511_v6 = vrot.slane %v1925_v1, 1  ;;  %vm509_vm1 = vcmask 1046528   ;;  %p403_p4 = scmp.lt.s32.totalorder %s1770_s28, 1  ;;  %s356_s3 = scalar_lea.vmem [#allocation10], %s1916_s9 }
  0x55   : > { %v510_v8 = vrot.slane %v1923_v0, 1  ;;  %vm433_vm2 = vcmask 7168   ;;  %vm458_vm3 = vcmask 121856   ;;  %v486_v46 = vmul.f32 -0.024806565, %v1925_v1  ;;  %s1349_s14 = sshll.u32 %s1770_s28, 4 }
  0x56   : > { %v422_v4 = vsel %vm419_vm0, %v420_v2, %v421_v3  ;;  %v425_v5 = vsel %vm419_vm0, 0.0, %v420_v2  ;;  %v1934_v7 = vsel %vm509_vm1, %v511_v6, 0.0  ;;  %v490_v47 = vmul.f32 0.21618132, %v1925_v1  ;;  %s1966_s30 = scalar_select %p403_p4, %s1770_s28, 1 }
  0x57   : > { %454 = vrot.lane.b32.xlu1 %v422_v4, %s1702_s23  ;;  %429 = vrot.lane.b32.xlu0 %v422_v4, %s1701_s18  ;;  %v1942_v9 = vsel %vm509_vm1, %v510_v8, %v511_v6  ;;  %v445_v15 = vmul.f32 0.09342637, %v422_v4  ;;  %v449_v19 = vmul.f32 -0.07689932, %v422_v4  ;;  %v444_v26 = vmul.f32 0.09342637, %v425_v5  ;;  %s1117_s13 = scalar_lea.hbm %s2110_s7, %s1349_s14 }
  0x58   : > { %v448_v30 = vmul.f32 -0.07689932, %v425_v5  ;;  %v485_v55 = vmul.f32 -0.024806565, %v1923_v0  ;;  %v489_v56 = vmul.f32 0.21618132, %v1923_v0 }
  0x59   : > { %s1347_s11 = sshll.u32 %s1966_s30, 5  ;;  %vm557_vm4 = vcmask 130048   ;;  %s1348_s17 = sshll.u32 %s1966_s30, 4  ;;  %vm643_vm5 = vcmask 15368  }
  0x5a   : > { %s407_s21 = scalar_lea.vmem %s2108_s5, %s1347_s11  ;;  %s412_s10 = scalar_lea.vmem %s2109_s6, %s1348_s17 }
  0x5b   : > { %s402_s26 = scalar_lea.vmem [#allocation11], %s1916_s9  ;;  %s1120_s16 = sshll.u32 %s1117_s13, 4  ;;  %s1121_s16 = int_to_ptr.hbm [resolvable:$true] %s1120_s16 }
  0x5c   : > { %469 = vrot.lane.b32.xlu2 %v1923_v0, %s1701_s18  ;;  %s1118_s15 = sshll.u32 %s402_s26, 4  ;;  %s1640_s11 = scalar_lea.hbm %s2110_s7, 32  ;;  %s1119_s15 = int_to_ptr.vmem [resolvable:$true] %s1118_s15 }
  0x5f   : > { %452 = vrot.lane.b32.xlu1 %v425_v5, %s1702_s23  ;;  %427 = vrot.lane.b32.xlu0 %v425_v5, %s1701_s18 }
  0x64   : > { %519 = vrot.lane.b32.xlu2 %v1934_v7, %s1701_s18 }
  0x67   : > { %493 = vrot.lane.b32.xlu1 %v1923_v0, %s1702_s23  ;;  %495 = vrot.lane.b32.xlu0 %v1925_v1, %s1702_s23  ;;  %v534_v0 = vmul.f32 0.15117198, %v1934_v7 }
  0x6c   : > { %541 = vrot.lane.b32.xlu2 %v1942_v9, %s1702_s23 }
  0x6f   : > { %543 = vrot.lane.b32.xlu1 %v1934_v7, %s1702_s23  ;;  %517 = vrot.lane.b32.xlu0 %v1942_v9, %s1701_s18  ;;  %s1100_s18 = scalar_lea.sflag [#allocation4], %s344_s8 }
  0xae   : > { %v472_v10 = vpop.permute.xlu2 %471 }
  0xaf   : > { %v476_v22 = vsel %vm433_vm2, 0.0, %v472_v10 }
  0xb0   : > { %v478_v28 = vmul.f32 0.030709183, %v476_v22  ;;  %v482_v37 = vmul.f32 0.28915724, %v476_v22 }
  0xb6   : > { %v470_v16 = vpop.permute.xlu2 %469 }
  0xb7   : > { %v475_v35 = vsel %vm433_vm2, 0.0, %v470_v16 }
  0xb8   : > { %v477_v43 = vmul.f32 0.030709183, %v475_v35  ;;  %v481_v50 = vmul.f32 0.28915724, %v475_v35 }
  0xbe   : > { %v520_v41 = vpop.permute.xlu2 %519 }
  0xbf   : > { %v524_v51 = vsel %vm433_vm2, 0.0, %v520_v41 }
  0xc0   : > { %v526_v61 = vmul.f32 -0.2881758, %v524_v51  ;;  %v530_v2 = vmul.f32 0.1819189, %v524_v51 }
  0xc6   : > { %v542_v8 = vpop.permute.xlu2 %541 }
  0xc9   : > { %v455_v11 = vpop.permute.xlu1 %454  ;;  %v430_v12 = vpop.permute.xlu0 %429 }
  0xca   : > { %v435_v13 = vsel %vm433_vm2, 0.0, %v430_v12  ;;  %v460_v17 = vsel %vm458_vm3, %v455_v11, 0.0  ;;  %v538_v11 = vmul.f32 0.11146923, %v1934_v7 }
  0xcb   : > { %v437_v14 = vmul.f32 -0.005660923, %v435_v13  ;;  %v441_v18 = vmul.f32 0.18203408, %v435_v13  ;;  %v462_v20 = vmul.f32 0.059140593, %v460_v17 }
  0xcc   : > { %v466_v23 = vmul.f32 0.22796467, %v460_v17  ;;  %v533_v17 = vmul.f32 0.15117198, %v1942_v9 }
  0xcd   : > { %v447_v21 = vadd.f32 %v445_v15, %v437_v14  ;;  %v451_v24 = vadd.f32 %v449_v19, %v441_v18  ;;  %v547_v18 = vsel %vm458_vm3, %v542_v8, 0.0 }
  0xcf   : > { %v464_v32 = vadd.f32 %v462_v20, %v447_v21  ;;  %v468_v36 = vadd.f32 %v466_v23, %v451_v24 }
  0xd1   : > { %v453_v25 = vpop.permute.xlu1 %452  ;;  %v428_v27 = vpop.permute.xlu0 %427  ;;  %v480_v44 = vadd.f32 %v478_v28, %v464_v32  ;;  %v484_v48 = vadd.f32 %v482_v37, %v468_v36  ;;  %v537_v28 = vmul.f32 0.11146923, %v1942_v9  ;;  %v565_v9 = vld [vmem:[#allocation5] sm:$0xff] }
  0xd2   : > { %v459_v29 = vsel %vm458_vm3, %v453_v25, 0.0  ;;  %v434_v31 = vsel %vm433_vm2, 0.0, %v428_v27 }
  0xd3   : > { %v461_v33 = vmul.f32 0.059140593, %v459_v29  ;;  %v436_v34 = vmul.f32 -0.005660923, %v434_v31  ;;  %v465_v38 = vmul.f32 0.22796467, %v459_v29  ;;  %v488_v59 = vadd.f32 %v486_v46, %v480_v44 }
  0xd4   : > { %v440_v39 = vmul.f32 0.18203408, %v434_v31  ;;  %v492_v63 = vadd.f32 %v490_v47, %v484_v48  ;;  %v549_v31 = vmul.f32 0.104281925, %v547_v18 }
  0xd5   : > { %v446_v40 = vadd.f32 %v444_v26, %v436_v34  ;;  %v553_v34 = vmul.f32 0.043811437, %v547_v18 }
  0xd6   : > { %v450_v42 = vadd.f32 %v448_v30, %v440_v39  ;;  %v564_v39 = vld [vmem:[#allocation2 + $0x8] sm:$0xff] }
  0xd7   : > { %v463_v45 = vadd.f32 %v461_v33, %v446_v40 }
  0xd8   : > { %v467_v49 = vadd.f32 %v465_v38, %v450_v42  ;;  %v563_v38 = vld [vmem:[#allocation2] sm:$0xff] }
  0xd9   : > { %v494_v52 = vpop.permute.xlu1 %493  ;;  %v496_v53 = vpop.permute.xlu0 %495  ;;  %v479_v54 = vadd.f32 %v477_v43, %v463_v45  ;;  %v566_v45 = vld [vmem:[#allocation5 + $0x8] sm:$0xff] }
  0xda   : > { %v500_v57 = vsel %vm458_vm3, %v496_v53, 0.0  ;;  %v499_v58 = vsel %vm458_vm3, %v494_v52, 0.0  ;;  %v483_v62 = vadd.f32 %v481_v50, %v467_v49 }
  0xdb   : > { %v502_v60 = vmul.f32 0.04338463, %v500_v57  ;;  %v506_v1 = vmul.f32 -0.011258642, %v500_v57  ;;  %v487_v4 = vadd.f32 %v485_v55, %v479_v54  ;;  %v501_v5 = vmul.f32 0.04338463, %v499_v58 }
  0xdc   : > { %v491_v12 = vadd.f32 %v489_v56, %v483_v62  ;;  %v505_v13 = vmul.f32 -0.011258642, %v499_v58  ;;  %v1703_v54 = vmov 1   ;;  %v635_v55 = vld [vmem:[#allocation7] sm:$0xff]  ;;  %v636_v58 = vld [vmem:[#allocation7 + $0x8] sm:$0xff] }
  0xdd   : > { %v504_v3 = vadd.f32 %v502_v60, %v488_v59  ;;  %v508_v6 = vadd.f32 %v506_v1, %v492_v63  ;;  %v503_v19 = vadd.f32 %v501_v5, %v487_v4  ;;  %1460 = vset.pattern.permute.xlu2 %v1703_v54  ;;  %1462 = vset.pattern.permute.xlu1 %v1703_v54 }
  0xde   : > { %v507_v26 = vadd.f32 %v505_v13, %v491_v12  ;;  %1461 = vset.pattern.permute.xlu0 %v1703_v54 }
  0xdf   : > { %v528_v10 = vadd.f32 %v526_v61, %v504_v3  ;;  %v532_v14 = vadd.f32 %v530_v2, %v508_v6 }
  0xe1   : > { %v544_v15 = vpop.permute.xlu1 %543  ;;  %v518_v16 = vpop.permute.xlu0 %517  ;;  %v536_v20 = vadd.f32 %v534_v0, %v528_v10  ;;  %v540_v7 = vadd.f32 %v538_v11, %v532_v14 }
  0xe2   : > { %v548_v21 = vsel %vm458_vm3, %v544_v15, 0.0  ;;  %v523_v22 = vsel %vm433_vm2, 0.0, %v518_v16 }
  0xe3   : > { %v550_v23 = vmul.f32 0.104281925, %v548_v21  ;;  %v554_v24 = vmul.f32 0.043811437, %v548_v21  ;;  %v525_v25 = vmul.f32 -0.2881758, %v523_v22 }
  0xe4   : > { %v529_v27 = vmul.f32 0.1819189, %v523_v22 }
  0xe5   : > { %v552_v29 = vadd.f32 %v550_v23, %v536_v20  ;;  %v527_v30 = vadd.f32 %v525_v25, %v503_v19  ;;  %v556_v32 = vadd.f32 %v554_v24, %v540_v7 }
  0xe6   : > { %v531_v33 = vadd.f32 %v529_v27, %v507_v26 }
  0xe7   : > { %559 = vst.msk [vmem:[%s407_s21 + $0x8] sm:$0xff] %vm557_vm4, %v552_v29  ;;  %v535_v35 = vadd.f32 %v533_v17, %v527_v30  ;;  %587 = vmatpush.msra.mxu0 %v552_v29  ;;  %1350 = vmatpush.msra.mxu1 %v552_v29 }
  0xe8   : > { %1319 = vst.msk [vmem:[%s407_s21 + $0x18] sm:$0xff] %vm557_vm4, %v556_v32  ;;  %v539_v36 = vadd.f32 %v537_v28, %v531_v33 }
  0xe9   : > { %v551_v37 = vadd.f32 %v549_v31, %v535_v35 }
  0xea   : > { %v555_v40 = vadd.f32 %v553_v34, %v539_v36 }
  0xeb   : > { %558 = vst.msk [vmem:[%s407_s21] sm:$0xff] %vm557_vm4, %v551_v37  ;;  %588 = vmatpush.msra.mxu0 %v551_v37  ;;  %1351 = vmatpush.msra.mxu1 %v551_v37 }
  0xec   : > { %1320 = vmatmul.msk.f32.vlgmr.msra.gmra.mxu0 %vm557_vm4, %v563_v38  ;;  %1321 = vmatmul.msk.f32.vlgmr.msra.gmra.mxu1 %vm557_vm4, %v564_v39  ;;  %1318 = vst.msk [vmem:[%s407_s21 + $0x10] sm:$0xff] %vm557_vm4, %v555_v40 }
  0xed   : > { %618 = vmatpush.msrb.mxu1 %v556_v32 }
  0xef   : > { %619 = vmatpush.msrb.mxu1 %v555_v40  ;;  %v1704_v40 = vmov 0  }
  0xf4   : > { %1322 = vmatmul.msk.f32.vlgmr.msrb.gmra.mxu1 %vm557_vm4, %v563_v38 }
  0xfc   : > { %1323 = vmatmul.msk.f32.gmra.mxu1 %vm557_vm4, %v564_v39 }
 0x169   : > { %v590_v41 = vpop.f32.mrf.mxu0  ;;  %v593_v42 = vpop.f32.mrf.mxu1 }
 0x16a   : > { %v596_v43 = vmul.f32 %v590_v41, %v565_v9  ;;  %v597_v46 = vmul.f32 %v593_v42, %v566_v45 }
 0x16c   : > { %v598_v44 = vsel %vm557_vm4, %v596_v43, 0.0  ;;  %v601_v50 = vsel %vm557_vm4, %v597_v46, 0.0 }
 0x16d   : > { %599 = vadd.xlane.f32.xlu2 %v598_v44 }
 0x171   : > { %v621_v47 = vpop.f32.mrf.mxu1 }
 0x172   : > { %v627_v48 = vmul.f32 %v621_v47, %v565_v9 }
 0x174   : > { %v629_v49 = vsel %vm557_vm4, %v627_v48, 0.0 }
 0x175   : > { %630 = vadd.xlane.f32.xlu0 %v629_v49  ;;  %602 = vadd.xlane.f32.xlu2 %v601_v50 }
 0x179   : > { %v624_v51 = vpop.f32.mrf.mxu1 }
 0x17a   : > { %v628_v52 = vmul.f32 %v624_v51, %v566_v45 }
 0x17c   : > { %v632_v53 = vsel %vm557_vm4, %v628_v52, 0.0 }
 0x17d   : > { %633 = vadd.xlane.f32.xlu1 %v632_v53 }
 0x1e0   : > { %v600_v56 = vpop.xlane.xlu2 %599 }
 0x1e1   : > { %v637_v57 = vadd.f32 %v635_v55, %v600_v56 }
 0x1e3   : > { %641 = vst.msk [vmem:[%s412_s10] sm:$0xff] %vm433_vm2, %v637_v57  ;;  %v648_v30 = vadd.f32 1.0, %v637_v57  ;;  %v416_v57 = vld [vmem:[%s356_s3 + $0x8] sm:$0xff] }
 0x1e4   : > { %788 = vmatpush.msra.mxu2 %v416_v57 }
 0x1e5   : > { %v815_v31 = vmul.f32 0.5, %v648_v30  ;;  %v650_v33 = vmul.f32 16.0, %v648_v30 }
 0x1e7   : > { %v817_v32 = vmul.f32 16.0, %v815_v31  ;;  %v1324_v35 = vadd.f32 -1.0, %v650_v33 }
 0x1e8   : > { %v631_v59 = vpop.xlane.xlu0 %630  ;;  %v603_v60 = vpop.xlane.xlu2 %602 }
 0x1e9   : > { %v639_v61 = vadd.f32 %v635_v55, %v631_v59  ;;  %v638_v62 = vadd.f32 %v636_v58, %v603_v60  ;;  %v819_v34 = vfloor.f32 %v817_v32  ;;  %v654_v37 = vmul.f32 0.5, %v1324_v35 }
 0x1eb   : > { %644 = vst.msk [vmem:[%s412_s10] sm:$0xff] %vm643_vm5, %v639_v61  ;;  %v656_v63 = vadd.f32 1.0, %v639_v61  ;;  %v821_v36 = vmax.f32 %v819_v34, 0.0  ;;  %v649_v38 = vadd.f32 1.0, %v638_v62  ;;  %v664_v41 = vfloor.f32 %v654_v37 }
 0x1ec   : > { %642 = vst.msk [vmem:[%s412_s10 + $0x8] sm:$0xff] %vm433_vm2, %v638_v62 }
 0x1ed   : > { %v658_v1 = vmul.f32 16.0, %v656_v63  ;;  %v805_v2 = vmul.f32 0.5, %v656_v63  ;;  %v2011_v39 = vmin.f32 %v821_v36, 15.0  ;;  %v816_v9 = vmul.f32 0.5, %v649_v38 }
 0x1ee   : > { %v1353_v43 = vcvt.f32.s32 %v664_v41  ;;  %v651_v48 = vmul.f32 16.0, %v649_v38  ;;  %v668_v49 = vsub.f32 %v654_v37, %v664_v41  ;;  %v646_v63 = vlaneseq }
 0x1ef   : > { %v1326_v3 = vadd.f32 -1.0, %v658_v1  ;;  %v807_v4 = vmul.f32 16.0, %v805_v2  ;;  %v818_v42 = vmul.f32 16.0, %v816_v9 }
 0x1f0   : > { %v634_v5 = vpop.xlane.xlu1 %633  ;;  %v698_v46 = vadd.s32 1, %v1353_v43  ;;  %v1325_v50 = vadd.f32 -1.0, %v651_v48  ;;  %v684_v51 = vsub.f32 1.0, %v668_v49 }
 0x1f1   : > { %v662_v6 = vmul.f32 0.5, %v1326_v3  ;;  %v640_v0 = vadd.f32 %v636_v58, %v634_v5  ;;  %v809_v8 = vfloor.f32 %v807_v4  ;;  %v820_v44 = vfloor.f32 %v818_v42  ;;  %v415_v58 = vld [vmem:[%s356_s3] sm:$0xff] }
 0x1f2   : > { %v655_v52 = vmul.f32 0.5, %v1325_v50  ;;  %789 = vmatpush.msra.mxu2 %v415_v58  ;;  %v2025_v3 = vand.u32 127, %v646_v63 }
 0x1f3   : > { %645 = vst.msk [vmem:[%s412_s10 + $0x8] sm:$0xff] %vm643_vm5, %v640_v0  ;;  %v657_v10 = vadd.f32 1.0, %v640_v0  ;;  %v666_v11 = vfloor.f32 %v662_v6  ;;  %v811_v12 = vmax.f32 %v809_v8, 0.0  ;;  %v822_v45 = vmax.f32 %v820_v44, 0.0 }
 0x1f4   : > { %v665_v53 = vfloor.f32 %v655_v52 }
 0x1f5   : > { %v659_v13 = vmul.f32 16.0, %v657_v10  ;;  %v806_v14 = vmul.f32 0.5, %v657_v10  ;;  %v1357_v15 = vcvt.f32.s32 %v666_v11  ;;  %v2002_v16 = vmin.f32 %v811_v12, 15.0 }
 0x1f6   : > { %v670_v17 = vsub.f32 %v662_v6, %v666_v11  ;;  %v2016_v47 = vmin.f32 %v822_v45, 15.0  ;;  %v1355_v55 = vcvt.f32.s32 %v665_v53  ;;  %v669_v59 = vsub.f32 %v655_v52, %v665_v53 }
 0x1f7   : > { %v1327_v18 = vadd.f32 -1.0, %v659_v13  ;;  %v808_v19 = vmul.f32 16.0, %v806_v14  ;;  %723 = vperm.xlu2 %1460, %v1357_v15   ;;  %860 = vrot.lane.b32.xlu0 %v2002_v16, %s1702_s23  ;;  %v744_v25 = vadd.s32 1, %v1357_v15  ;;  %v1361_v2 = vcvt.f32.s32 %v2002_v16 }
 0x1f8   : > { %v730_v20 = vsub.f32 1.0, %v670_v17  ;;  %v699_v56 = vadd.s32 1, %v1355_v55  ;;  %v685_v60 = vsub.f32 1.0, %v669_v59 }
 0x1f9   : > { %v663_v21 = vmul.f32 0.5, %v1327_v18  ;;  %v810_v22 = vfloor.f32 %v808_v19 }
 0x1fa   : > { %734 = vperm.xlu1 %1462, %v730_v20  }
 0x1fb   : > { %v812_v23 = vmax.f32 %v810_v22, 0.0  ;;  %v667_v24 = vfloor.f32 %v663_v21 }
 0x1fd   : > { %v2006_v7 = vmin.f32 %v812_v23, 15.0  ;;  %v671_v26 = vsub.f32 %v663_v21, %v667_v24  ;;  %v1359_v27 = vcvt.f32.s32 %v667_v24  ;;  %v850_v24 = vshrl.u32 %v646_v63, 7 }
 0x1ff   : > { %756 = vperm.xlu2 %1460, %v670_v17   ;;  %747 = vperm.xlu0 %1461, %v744_v25   ;;  %v731_v28 = vsub.f32 1.0, %v671_v26  ;;  %v745_v29 = vadd.s32 1, %v1359_v27  ;;  %v851_v25 = vadd.s32 8, %v850_v24  ;;  %vm852_vm11 = vcmp.eq.s32.totalorder %v850_v24, %v2025_v3 }
 0x201   : > { %vm853_vm10 = vcmp.eq.s32.totalorder %v851_v25, %v2025_v3  ;;  %vm857_vm0 = vcmp.gt.s32.totalorder %v2025_v3, %v851_v25 }
 0x202   : > { %862 = vrot.lane.b32.xlu1 %v2006_v7, %s1702_s23  ;;  %s1634_s23 = sshra.s32 %s1121_s16, 4  ;;  %s1635_s23 = int_to_ptr.hbm [resolvable:$true] %s1634_s23 }
 0x203   : > { %s1636_s28 = scalar_lea.hbm %s1635_s23, 16  ;;  %p1641_p13 = scmp.lt.s32.totalorder %s1635_s23, %s2110_s7 }
 0x204   : > { %p1637_p8 = scmp.ne.s32.totalorder %s1635_s23, %s1636_s28  ;;  %p1642_p0 = scmp.lt.s32.totalorder %s1640_s11, %s1636_s28 }
 0x206   : > { %p1638_p2 = pnand %p1637_p8, %p1825_p7  ;;  %p1643_p3 = por %p1642_p0, %p1641_p13 }
 0x207   : > { %739 = vperm.xlu2 %1460, %v731_v28   ;;  %750 = vperm.xlu0 %1461, %v745_v29  }
 0x208   : > { %p1639_p9 = pneg %p1638_p2 }
 0x20a   : > { %726 = vperm.xlu1 %1462, %v1359_v27   ;;  %v1705_v27 = vmov 1.0   ;;  %p1644_p5 = pnand %p1643_p3, %p1639_p9 }
 0x20b   : > { %1330 = vmatpush.msk.msra.mxu3 %vm853_vm10, %v1705_v27 }
 0x20d   : > { %1331 = vmatpush.msk.msra.mxu3 %vm852_vm11, %v1705_v27 }
 0x20f   : > { %1333 = vmatpush.msk.msrb.mxu3 %vm853_vm10, %v1705_v27 }
 0x211   : > { %1334 = vmatpush.msk.msrb.mxu3 %vm852_vm11, %v1705_v27 }
 0x212   : > { %761 = vperm.xlu1 %1462, %v671_v26  }
 0x21a   : > { %978 = vperm.xlu1 %1462, %v2002_v16  }
 0x222   : > { %1463 = vset.pattern.permute.xlu1 %v1704_v40 }
 0x223   : > { %994 = vperm.xlu1 %1463, %v2011_v39  }
 0x22b   : > { %677 = vperm.xlu1 %1463, %v1353_v43  }
 0x22d   : > { %921 = vxpose.xlu2.b32.start [1/2] (short) (narrow) %v2011_v39, 8 }
 0x233   : > { %701 = vperm.xlu1 %1463, %v698_v46  }
 0x235   : > { %922 = vxpose.xlu2.b32.end [2/2] (short) (narrow) %v2016_v47, 8 }
 0x23b   : > { %1464 = vset.pattern.permute.xlu1 %v1703_v54 }
 0x23c   : > { %982 = vperm.xlu1 %1464, %v2006_v7  }
 0x244   : > { %1466 = vset.pattern.permute.xlu1 %v1704_v40 }
 0x245   : > { %688 = vperm.xlu1 %1466, %v684_v51  }
 0x24d   : > { %680 = vperm.xlu1 %1466, %v1355_v55  }
 0x251   : > { %v724_v61 = vpop.permute.xlu2 %723 }
 0x252   : > { %vm728_vm6 = vcmp.eq.s32.totalorder %v2025_v3, %v724_v61  ;;  %v1706_v61 = vmov 0.0  }
 0x255   : > { %704 = vperm.xlu1 %1466, %v699_v56  }
 0x259   : > { %v757_v5 = vpop.permute.xlu2 %756 }
 0x25d   : > { %693 = vperm.xlu1 %1466, %v685_v60  }
 0x265   : > { %715 = vperm.xlu1 %1466, %v669_v59  }
 0x269   : > { %v861_v62 = vpop.permute.xlu0 %860 }
 0x26a   : > { %866 = vxpose.xlu0.b32.start [1/2] (short) (narrow) %v861_v62, 8 }
 0x26c   : > { %v735_v1 = vpop.permute.xlu1 %734 }
 0x26d   : > { %1468 = vset.pattern.permute.xlu1 %v1703_v54  ;;  %v742_v6 = vsel %vm728_vm6, %v735_v1, 0.0  ;;  %v740_v54 = vpop.permute.xlu2 %739  ;;  %vm856_vm6 = vcmp.gt.s32.totalorder %v2025_v3, %v850_v24 }
 0x26e   : > { %828 = vperm.xlu1 %1468, %v1361_v2  }
 0x271   : > { %v748_v4 = vpop.permute.xlu0 %747 }
 0x272   : > { %vm752_vm7 = vcmp.eq.s32.totalorder %v2025_v3, %v748_v4  ;;  %v1363_v4 = vcvt.f32.s32 %v2006_v7 }
 0x273   : > { %v764_v0 = vsel %vm752_vm7, %v757_v5, 0.0  ;;  %v1367_v5 = vcvt.f32.s32 %v2016_v47 }
 0x274   : > { %v863_v8 = vpop.permute.xlu1 %862  ;;  %v766_v10 = vadd.f32 %v764_v0, %v742_v6  ;;  %v1365_v6 = vcvt.f32.s32 %v2011_v39 }
 0x275   : > { %867 = vxpose.xlu0.b32.end [2/2] (short) (narrow) %v863_v8, 8 }
 0x276   : > { %1328 = vmatmul.msk.f32.vlgmr.msra.gmra.mxu2 %vm557_vm4, %v766_v10 }
 0x279   : > { %v751_v12 = vpop.permute.xlu0 %750 }
 0x27a   : > { %vm753_vm9 = vcmp.eq.s32.totalorder %v2025_v3, %v751_v12 }
 0x27c   : > { %v727_v11 = vpop.permute.xlu1 %726 }
 0x27d   : > { %vm729_vm8 = vcmp.eq.s32.totalorder %v2025_v3, %v727_v11 }
 0x27e   : > { %v743_v14 = vsel %vm729_vm8, %v740_v54, 0.0 }
 0x284   : > { %v762_v13 = vpop.permute.xlu1 %761 }
 0x285   : > { %v765_v15 = vsel %vm753_vm9, %v762_v13, 0.0 }
 0x286   : > { %v767_v16 = vadd.f32 %v765_v15, %v743_v14 }
 0x288   : > { %1329 = vmatmul.msk.f32.gmra.mxu2 %vm557_vm4, %v767_v16 }
 0x28c   : > { %v979_v17 = vpop.permute.xlu1 %978 }
 0x295   : > { %v995_v18 = vpop.permute.xlu1 %994 }
 0x297   : > { %1467 = vset.pattern.permute.xlu2 %v1704_v40 }
 0x29d   : > { %v678_v19 = vpop.permute.xlu1 %677 }
 0x29e   : > { %710 = vperm.xlu2 %1467, %v668_v49   ;;  %vm682_vm12 = vcmp.eq.s32.totalorder %v2025_v3, %v678_v19 }
 0x2a5   : > { %v702_v20 = vpop.permute.xlu1 %701 }
 0x2a6   : > { %vm706_vm13 = vcmp.eq.s32.totalorder %v2025_v3, %v702_v20 }
 0x2ae   : > { %v983_v21 = vpop.permute.xlu1 %982 }
 0x2b7   : > { %v689_v22 = vpop.permute.xlu1 %688 }
 0x2b8   : > { %v696_v30 = vsel %vm682_vm12, %v689_v22, 0.0 }
 0x2bf   : > { %v681_v23 = vpop.permute.xlu1 %680 }
 0x2c0   : > { %vm683_vm15 = vcmp.eq.s32.totalorder %v2025_v3, %v681_v23 }
 0x2c6   : > { %v937_v26 = vpop.trf.xlu2 }
 0x2c7   : > { %v705_v28 = vpop.permute.xlu1 %704 }
 0x2c8   : > { %vm707_vm14 = vcmp.eq.s32.totalorder %v2025_v3, %v705_v28 }
 0x2cf   : > { %v694_v32 = vpop.permute.xlu1 %693 }
 0x2d0   : > { %v697_v9 = vsel %vm683_vm15, %v694_v32, 0.0 }
 0x2d7   : > { %v716_v37 = vpop.permute.xlu1 %715 }
 0x2d8   : > { %v719_v38 = vsel %vm707_vm14, %v716_v37, 0.0 }
 0x2d9   : > { %v721_v41 = vadd.f32 %v719_v38, %v697_v9 }
 0x2dc   : > { %1465 = vset.pattern.permute.xlu0 %v1704_v40 }
 0x2e0   : > { %v829_v0 = vpop.permute.xlu1 %828 }
 0x2e1   : > { %vm833_vm11 = vcmp.eq.s32.totalorder %v2025_v3, %v829_v0 }
 0x2e2   : > { %v835_v11 = vsel %vm833_vm11, 1.0, %v1706_v61 }
 0x2e3   : > { %999 = vperm.xlu0 %1465, %v2016_v47  }
 0x2f8   : > { %v711_v29 = vpop.permute.xlu2 %710 }
 0x2f9   : > { %v718_v31 = vsel %vm706_vm13, %v711_v29, 0.0  ;;  %v791_v34 = vpop.f32.mrf.mxu2 }
 0x2fa   : > { %v720_v33 = vadd.f32 %v718_v31, %v696_v30 }
 0x2fc   : > { %v797_v35 = vmul.f32 %v791_v34, %v720_v33 }
 0x2fe   : > { %v799_v36 = vsel %vm557_vm4, %v797_v35, 0.0 }
 0x2ff   : > { %800 = vadd.xlane.f32.xlu1 %v799_v36 }
 0x30b   : > { %v794_v42 = vpop.f32.mrf.mxu2 }
 0x30c   : > { %v798_v43 = vmul.f32 %v794_v42, %v721_v41 }
 0x30e   : > { %v802_v44 = vsel %vm557_vm4, %v798_v43, 0.0 }
 0x30f   : > { %803 = vadd.xlane.f32.xlu2 %v802_v44 }
 0x311   : > { %v882_v45 = vpop.trf.xlu0 }
 0x312   : > { %1332 = vmatmul.msk.f32.vlgmr.msra.gmra.mxu3 %vm557_vm4, %v882_v45 }
 0x31a   : > { %1335 = vmatmul.msk.f32.vlgmr.msrb.gmra.mxu3 %vm557_vm4, %v937_v26 }
 0x355   : > { %v1000_v53 = vpop.permute.xlu0 %999 }
 0x372   : > { %v801_v8 = vpop.xlane.xlu1 %800 }
 0x382   : > { %v804_v47 = vpop.xlane.xlu2 %803 }
 0x395   : > { %v918_v46 = vpop.f32.mrf.mxu3 }
 0x396   : > { %v976_v48 = vperm.slane %v918_v46, 0 }
 0x398   : > { %v986_v49 = vsub.f32 %v976_v48, %v983_v21  ;;  %v985_v51 = vsub.f32 %v976_v48, %v979_v17 }
 0x39a   : > { %v988_v55 = vand.u32 2147483647, %v986_v49  ;;  %v987_v58 = vand.u32 2147483647, %v985_v51 }
 0x39c   : > { %vm990_vm1 = vcmp.lt.f32.partialorder %v988_v55, 0.5  ;;  %vm989_vm7 = vcmp.lt.f32.partialorder %v987_v58, 0.5 }
 0x39d   : > { %v973_v50 = vpop.f32.mrf.mxu3 }
 0x39e   : > { %v991_v52 = vperm.slane %v973_v50, 0 }
 0x3a0   : > { %v1002_v56 = vsub.f32 %v991_v52, %v995_v18  ;;  %v1003_v57 = vsub.f32 %v991_v52, %v1000_v53 }
 0x3a2   : > { %v1004_v59 = vand.u32 2147483647, %v1002_v56  ;;  %v1005_v60 = vand.u32 2147483647, %v1003_v57 }
 0x3a4   : > { %vm1006_vm2 = vcmp.lt.f32.partialorder %v1004_v59, 0.5  ;;  %vm1007_vm3 = vcmp.lt.f32.partialorder %v1005_v60, 0.5 }
 0x3a5   : > { %vm1009_vm5 = vmand %vm990_vm1, %vm1007_vm3 }
 0x3a6   : > { %vm1011_vm8 = vmand %vm1009_vm5, %vm857_vm0 }
 0x3a7   : > { %v1013_v62 = vsel %vm1011_vm8, 1.0, %v1706_v61  ;;  %vm1008_vm9 = vmand %vm989_vm7, %vm1006_vm2 }
 0x3a8   : > { %v1017_v63 = vsel %vm557_vm4, %v1013_v62, 0.0  ;;  %vm1010_vm10 = vmand %vm1008_vm9, %vm856_vm6 }
 0x3a9   : > { %1018 = vadd.xlane.f32.xlu0 %v1017_v63  ;;  %v1012_v1 = vsel %vm1010_vm10, 1.0, %v1706_v61 }
 0x3aa   : > { %v1014_v2 = vsel %vm557_vm4, %v1012_v1, 0.0 }
 0x3ab   : > { %1015 = vadd.xlane.f32.xlu1 %v1014_v2 }
 0x3c4   : > { %831 = vperm.xlu1 %1468, %v1363_v4  }
 0x3cc   : > { %1469 = vset.pattern.permute.xlu1 %v1704_v40 }
 0x3cd   : > { %843 = vperm.xlu1 %1469, %v1367_v5  }
 0x3d5   : > { %840 = vperm.xlu1 %1469, %v1365_v6  }
 0x41c   : > { %v1019_v7 = vpop.xlane.xlu0 %1018 }
 0x41d   : > { %vm1021_vm13 = vcmp.gt.f32.partialorder %v1019_v7, 0.5 }
 0x41e   : > { %v1016_v10 = vpop.xlane.xlu1 %1015  ;;  %v1023_v40 = vsel %vm1021_vm13, 0.0, %v804_v47 }
 0x41f   : > { %vm1020_vm12 = vcmp.gt.f32.partialorder %v1016_v10, 0.5 }
 0x420   : > { %v1022_v12 = vsel %vm1020_vm12, 0.0, %v801_v8 }
 0x421   : > { %v1024_v54 = vmul.f32 %v1022_v12, %v835_v11 }
 0x423   : > { %1026 = vxpose.xlu1.b32.start [1/2] (short) (narrow) %v1024_v54, 16 }
 0x436   : > { %v832_v13 = vpop.permute.xlu1 %831 }
 0x437   : > { %vm834_vm14 = vcmp.eq.s32.totalorder %v2025_v3, %v832_v13 }
 0x438   : > { %v836_v39 = vsel %vm834_vm14, 1.0, %v1706_v61 }
 0x439   : > { %v1025_v14 = vmul.f32 %v1023_v40, %v836_v39 }
 0x43b   : > { %1027 = vxpose.xlu1.b32.end [2/2] (short) (narrow) %v1025_v14, 16 }
 0x43f   : > { %v844_v15 = vpop.permute.xlu1 %843 }
 0x440   : > { %vm846_vm15 = vcmp.eq.s32.totalorder %v2025_v3, %v844_v15 }
 0x441   : > { %1336 = vmatpush.msk.msrb.mxu0 %vm846_vm15, %v1705_v27 }
 0x447   : > { %v841_v16 = vpop.permute.xlu1 %840 }
 0x448   : > { %vm845_vm0 = vcmp.eq.s32.totalorder %v2025_v3, %v841_v16 }
 0x449   : > { %1337 = vmatpush.msk.msrb.mxu0 %vm845_vm0, %v1705_v27 }
 0x4d7   : > { %v1042_v17 = vpop.trf.xlu1 }
 0x4d8   : > { %1338 = vmatmul.msk.f32.vlgmr.msrb.gmra.mxu0 %vm557_vm4, %v1042_v17 }
 0x4df   : > { %v1043_v18 = vpop.trf.xlu1 }
 0x4e0   : > { %1339 = vmatmul.msk.f32.gmra.mxu0 %vm557_vm4, %v1043_v18 }
 0x555   : > { %v1081_v19 = vpop.f32.mrf.mxu0 }
 0x556   : > { %1087 = vst.msk [vmem:[%s402_s26] sm:$0xff] %vm557_vm4, %v1081_v19 }
 0x55d   : > { %v1084_v3 = vpop.f32.mrf.mxu0 }
 0x55e   : > { %1088 = vst.msk [vmem:[%s402_s26 + $0x8] sm:$0xff] %vm557_vm4, %v1084_v3 }
 0x55f   : > { %1647 = shalt.err (!%p1644_p5)
}
 0x560   : > { %s1707_s8 = smov 128   ;;  %s1708_s21 = smov 8  }
 0x561   : > { %1384 = dma.vmem_to_hbm [thread:$0]  (%p1825_p7), %s1119_s15, 256, %s1121_s16, %s1100_s18, %s1707_s8, %s1707_s8, %s1708_s21  }
 0x562 PF: > { %s2143_s20 = sld [smem:[#allocation17_spill]]  ;;  %s1151_s29 = sand.u32 1, %s1682_s24  }
 0x563   : > { %s1152_s10 = scalar_lea.sflag [#allocation4], %s1151_s29 }
 0x568   : > { %p2144_p11 = scmp.ge.s32.totalorder %s2143_s20, 2 }
 0x56a   : > { %p1404_p12 = pnand %p2144_p11, %p1784_p6 }
 0x56c   : > { %p1405_p1 = pneg %p1404_p12 }
 0x56e   : > { %1677 = dma.done.wait (%p1405_p1), %s1152_s10, 256  }
 0x56f   : > { %1679 = vsyncadd (%p1405_p1), %s1152_s10, 4294967040  ;;  %s2145_s27 = sld [smem:[#allocation19_spill]]  ;;  %s2148_s24 = smov %s1686_s25 }
 0x570   : > { %s2146_s3 = sld [smem:[#allocation16_spill]] }
 0x571   : > { %s2147_s26 = sld [smem:[#allocation20_spill]] }
 0x575   : > { %p23_p10 = scmp.ge.s32.totalorder %s2145_s27, 4  }
 0x576   : > { %s2149_s25 = smov %s2146_s3 }
 0x577   :  { %25 = sbr.rel (!%p23_p10) target bundleno = 10 (0xa), region = 134 }
 0x57c   :  { %1158 = vsyncpa [#allocation3], 1 }
 0x57d   :  { %1160 = vsyncpa [#allocation3 + $0x1], 1 }
 0x57e   :  { %1161 = vsyncpa [#allocation6], 1 }
 0x57f   :  { %1162 = vsyncpa [#allocation9], 1 }
 0x580   :  { %1164 = vsyncpa [#allocation9 + $0x1], 1 }
 0x581   :  { %1165 = vsyncpa [#allocation4], 1 }
 0x582   :  { %1167 = vsyncpa [#allocation4 + $0x1], 1 }

</bundles_post_ra>
